<compile_context>
chip_gen: v7x
topology: tpu7x:2x2x1
jax: 0.10.0
libtpu: 0.0.40
codegen_flags: <defaults>
</compile_context>

<pallas_src>
import functools

import jax
import jax.numpy as jnp
from jax.experimental import pallas as pl
from jax.experimental.pallas import tpu as pltpu


def _round_up(x, m=128):
    return ((x + m - 1) // m) * m


# ----------------------------------------------------------------------------
# Pallas kernel: fused attention + GRU step + output projection
# ----------------------------------------------------------------------------
def decoder_kernel(
    emb_ref, hid_ref, enc_ref,                                  # activations (padded)
    wae_ref, wah_ref, ba_ref, va_ref,                           # attention params
    wie_ref, wiw_ref, bi_ref, wh_ref, bh_ref,                   # fused GRU params
    wfch_ref, wfcw_ref, wfce_ref, bfc_ref,                      # split fc_out params
    pred_ref, hout_ref,                                         # outputs (padded)
    *, bb, s, hp,
):
    f32 = jnp.float32

    emb = emb_ref[...]            # (BB, Ep)
    hid = hid_ref[...]            # (BB, Hp)
    enc2 = enc_ref[...]           # (BB*S, D2p)   batch-major flattened encoder outputs
    d2p = enc2.shape[-1]

    # ---- attention: a = softmax(v . tanh(W_a [hidden; enc_out])) ----
    # single 2-D matmul over all (batch, src) rows instead of a batched 3-D einsum
    enc_proj = jnp.dot(enc2, wae_ref[...], preferred_element_type=f32)       # (BB*S, Hp)
    hid_proj = jnp.dot(hid, wah_ref[...], preferred_element_type=f32)        # (BB, Hp)
    energy = jnp.tanh(enc_proj.reshape(bb, s, hp)
                      + hid_proj[:, None, :]
                      + ba_ref[...][None, :, :])                             # (BB, S, Hp)
    scores = jnp.sum(energy * va_ref[...][None, :, :], axis=-1)              # (BB, S)

    m = jnp.max(scores, axis=-1, keepdims=True)
    e = jnp.exp(scores - m)
    denom = jnp.sum(e, axis=-1, keepdims=True)
    attn = e * pl.reciprocal(denom, approx=True)                             # (BB, S)

    # ---- weighted context: bmm(a.unsqueeze(1), encoder_outputs) ----
    enc3 = enc2.reshape(bb, s, d2p)
    weighted = jnp.einsum('bqs,bsd->bqd', attn[:, None, :], enc3,
                          preferred_element_type=f32).reshape(bb, d2p)       # (BB, D2p)

    # ---- GRU single step, fused gates (PyTorch order r, z, n) ----
    # x @ Wi == emb @ Wi_emb + weighted @ Wi_weighted  (no in-kernel concat)
    gi = (jnp.dot(emb, wie_ref[...], preferred_element_type=f32)
          + jnp.dot(weighted, wiw_ref[...], preferred_element_type=f32)
          + bi_ref[...])                                                      # (BB, 3*Hp)
    gh = jnp.dot(hid, wh_ref[...], preferred_element_type=f32) + bh_ref[...]  # (BB, 3*Hp)

    r = jax.nn.sigmoid(gi[:, 0 * hp:1 * hp] + gh[:, 0 * hp:1 * hp])
    z = jax.nn.sigmoid(gi[:, 1 * hp:2 * hp] + gh[:, 1 * hp:2 * hp])
    n = jnp.tanh(gi[:, 2 * hp:3 * hp] + r * gh[:, 2 * hp:3 * hp])
    h_new = (1.0 - z) * n + z * hid                                           # (BB, Hp)

    # ---- fc_out(cat(output, weighted, embedded)) as sum of partial matmuls ----
    pred = (jnp.dot(h_new, wfch_ref[...], preferred_element_type=f32)
            + jnp.dot(weighted, wfcw_ref[...], preferred_element_type=f32)
            + jnp.dot(emb, wfce_ref[...], preferred_element_type=f32)
            + bfc_ref[...])                                                   # (BB, Op)

    pred_ref[...] = pred
    hout_ref[...] = h_new


# ----------------------------------------------------------------------------
# Wrapper: embedding lookup (glue), padding, pallas_call
# ----------------------------------------------------------------------------
@functools.partial(jax.jit, static_argnames=("dec_hid_dim", "output_dim"))
def decoder_forward(inputs, hidden, encoder_outputs, packed, *, dec_hid_dim, output_dim):
    # Embedding lookup (gather stays in plain JAX); table columns are pre-padded to Ep.
    emb = jnp.take(packed['emb_table'], inputs, axis=0)           # (B, Ep)

    B = emb.shape[0]
    _, S, D2 = encoder_outputs.shape
    H = dec_hid_dim

    Ep = packed['wfc_e'].shape[0]
    Hp = packed['wa_h'].shape[0]
    D2p = packed['wa_e'].shape[0]
    Op = packed['b_fc'].shape[1]

    # Zero-pad activations to lane-dense widths (exact: padded lanes contribute 0).
    hid = jnp.pad(hidden, ((0, 0), (0, Hp - H)))                  # (B, Hp)
    enc = jnp.pad(encoder_outputs.reshape(B * S, D2),
                  ((0, 0), (0, D2p - D2)))                        # (B*S, D2p)

    # Batch tiling: real "parallel" grid axis (megacore-shardable on v7x).
    BB = 8 if (B % 8 == 0) else B
    grid = (B // BB,)

    def batch_spec(rows, cols):
        return pl.BlockSpec((rows, cols), lambda i: (i, 0))

    def full_spec(shape):
        return pl.BlockSpec(shape, lambda i: (0, 0))              # weights: VMEM-resident

    kernel = functools.partial(decoder_kernel, bb=BB, s=S, hp=Hp)

    in_specs = [
        batch_spec(BB, Ep),                 # emb
        batch_spec(BB, Hp),                 # hid
        batch_spec(BB * S, D2p),            # enc (flattened batch-major)
        full_spec(packed['wa_e'].shape),
        full_spec(packed['wa_h'].shape),
        full_spec(packed['b_a'].shape),
        full_spec(packed['v_a'].shape),
        full_spec(packed['wi_e'].shape),
        full_spec(packed['wi_w'].shape),
        full_spec(packed['b_i'].shape),
        full_spec(packed['wh'].shape),
        full_spec(packed['b_h'].shape),
        full_spec(packed['wfc_h'].shape),
        full_spec(packed['wfc_w'].shape),
        full_spec(packed['wfc_e'].shape),
        full_spec(packed['b_fc'].shape),
    ]
    out_shape = (jax.ShapeDtypeStruct((B, Op), jnp.float32),
                 jax.ShapeDtypeStruct((B, Hp), jnp.float32))
    out_specs = (batch_spec(BB, Op), batch_spec(BB, Hp))

    pred_p, h_p = pl.pallas_call(
        kernel,
        out_shape=out_shape,
        grid=grid,
        in_specs=in_specs,
        out_specs=out_specs,
        compiler_params=pltpu.CompilerParams(
            dimension_semantics=("parallel",)),
    )(emb, hid, enc,
      packed['wa_e'], packed['wa_h'], packed['b_a'], packed['v_a'],
      packed['wi_e'], packed['wi_w'], packed['b_i'], packed['wh'], packed['b_h'],
      packed['wfc_h'], packed['wfc_w'], packed['wfc_e'], packed['b_fc'])

    return pred_p[:, :output_dim], h_p[:, :H]


# ----------------------------------------------------------------------------
# Pure-JAX reference (natural, un-padded parameter layout)
# ----------------------------------------------------------------------------
def decoder_reference(inputs, hidden, encoder_outputs, p):
    emb = jnp.take(p['emb_table'], inputs, axis=0)
    enc = encoder_outputs
    enc_proj = jnp.einsum('bsd,dh->bsh', enc, p['wa_e'])
    hid_proj = hidden @ p['wa_h']
    energy = jnp.tanh(enc_proj + hid_proj[:, None, :] + p['b_a'][None, :, :])
    scores = jnp.sum(energy * p['v_a'][None, :, :], axis=-1)
    attn = jax.nn.softmax(scores, axis=-1)
    weighted = jnp.sum(attn[:, :, None] * enc, axis=1)
    x = jnp.concatenate([emb, weighted], axis=1)
    r = jax.nn.sigmoid(x @ p['wi_r'] + p['bi_r'] + hidden @ p['wh_r'] + p['bh_r'])
    z = jax.nn.sigmoid(x @ p['wi_z'] + p['bi_z'] + hidden @ p['wh_z'] + p['bh_z'])
    n = jnp.tanh(x @ p['wi_n'] + p['bi_n'] + r * (hidden @ p['wh_n'] + p['bh_n']))
    h_new = (1.0 - z) * n + z * hidden
    feat = jnp.concatenate([h_new, weighted, emb], axis=1)
    pred = feat @ p['w_fc'] + p['b_fc']
    return pred, h_new


# ----------------------------------------------------------------------------
# Parameter construction (natural nn.Module-like shapes, pre-transposed to (in, out))
# ----------------------------------------------------------------------------
def make_params(key, output_dim, embed_dim, enc_hid_dim, dec_hid_dim):
    D2 = 2 * enc_hid_dim
    H = dec_hid_dim
    rnn_in = D2 + embed_dim
    fc_in = H + D2 + embed_dim

    def u(key, shape):
        return jax.random.uniform(key, shape, jnp.float32, -0.1, 0.1)

    keys = jax.random.split(key, 16)
    params = {
        'emb_table': u(keys[0], (output_dim, embed_dim)),
        # attention: Linear(D2 + H -> H) split into enc/hid halves, plus v: Linear(H -> 1)
        'wa_e': u(keys[1], (D2, H)),
        'wa_h': u(keys[2], (H, H)),
        'b_a': u(keys[3], (1, H)),
        'v_a': u(keys[4], (1, H)),
        # nn.GRU(rnn_in, H): per-gate, pre-transposed to (in, out), gate order r, z, n
        'wi_r': u(keys[5], (rnn_in, H)),
        'wi_z': u(keys[6], (rnn_in, H)),
        'wi_n': u(keys[7], (rnn_in, H)),
        'bi_r': u(keys[8], (1, H)),
        'bi_z': u(keys[9], (1, H)),
        'bi_n': u(keys[10], (1, H)),
        'wh_r': u(keys[11], (H, H)),
        'wh_z': u(keys[12], (H, H)),
        'wh_n': u(keys[13], (H, H)),
        'bh_r': u(keys[8], (1, H)) * 0.5,
        'bh_z': u(keys[9], (1, H)) * 0.5,
        'bh_n': u(keys[10], (1, H)) * 0.5,
        # nn.Linear(fc_in, output_dim), row order [h_new | weighted | emb]
        'w_fc': u(keys[14], (fc_in, output_dim)),
        'b_fc': u(keys[15], (1, output_dim)),
    }
    return params


# ----------------------------------------------------------------------------
# One-time packing: fuse GRU gates, split weights per input block, pad to 128 lanes
# ----------------------------------------------------------------------------
def pack_params(p, output_dim, embed_dim, enc_hid_dim, dec_hid_dim):
    E, D2, H, O = embed_dim, 2 * enc_hid_dim, dec_hid_dim, output_dim
    Ep, D2p, Hp, Op = (_round_up(d) for d in (E, D2, H, O))

    def pad_to(x, rows, cols):
        return jnp.pad(x, ((0, rows - x.shape[0]), (0, cols - x.shape[1])))

    def fuse_gates(wr, wz, wn, rows_p):
        # per-gate pad to Hp lanes so gate slices land on 128-lane boundaries
        return jnp.concatenate(
            [pad_to(wr, rows_p, Hp), pad_to(wz, rows_p, Hp), pad_to(wn, rows_p, Hp)],
            axis=1)

    # split GRU input weights by input block: x = [emb | weighted]
    wir_e, wir_w = p['wi_r'][:E, :], p['wi_r'][E:, :]
    wiz_e, wiz_w = p['wi_z'][:E, :], p['wi_z'][E:, :]
    win_e, win_w = p['wi_n'][:E, :], p['wi_n'][E:, :]

    packed = {
        'emb_table': pad_to(p['emb_table'], p['emb_table'].shape[0], Ep),
        'wa_e': pad_to(p['wa_e'], D2p, Hp),
        'wa_h': pad_to(p['wa_h'], Hp, Hp),
        'b_a': pad_to(p['b_a'], 1, Hp),
        'v_a': pad_to(p['v_a'], 1, Hp),
        'wi_e': fuse_gates(wir_e, wiz_e, win_e, Ep),          # (Ep, 3*Hp)
        'wi_w': fuse_gates(wir_w, wiz_w, win_w, D2p),         # (D2p, 3*Hp)
        'b_i': fuse_gates(p['bi_r'], p['bi_z'], p['bi_n'], 1),
        'wh': fuse_gates(p['wh_r'], p['wh_z'], p['wh_n'], Hp),
        'b_h': fuse_gates(p['bh_r'], p['bh_z'], p['bh_n'], 1),
        # split fc_out by input block: feat = [h_new | weighted | emb]
        'wfc_h': pad_to(p['w_fc'][:H, :], Hp, Op),
        'wfc_w': pad_to(p['w_fc'][H:H + D2, :], D2p, Op),
        'wfc_e': pad_to(p['w_fc'][H + D2:, :], Ep, Op),
        'b_fc': pad_to(p['b_fc'], 1, Op),
    }
    return packed


if __name__ == "__main__":
    # Small shapes consistent with the module; B=16 exercises a 2-step parallel batch grid.
    B, S = 16, 8
    output_dim, embed_dim, enc_hid_dim, dec_hid_dim = 64, 32, 32, 32
    D2 = 2 * enc_hid_dim

    key = jax.random.PRNGKey(0)
    k_par, k_in, k_hid, k_enc = jax.random.split(key, 4)

    params = make_params(k_par, output_dim, embed_dim, enc_hid_dim, dec_hid_dim)
    packed = pack_params(params, output_dim, embed_dim, enc_hid_dim, dec_hid_dim)

    inputs = jax.random.randint(k_in, (B,), 0, output_dim, dtype=jnp.int32)   # token ids
    hidden = jax.random.normal(k_hid, (B, dec_hid_dim), jnp.float32)
    encoder_outputs = jax.random.normal(k_enc, (B, S, D2), jnp.float32)

    pred, h_new = decoder_forward(inputs, hidden, encoder_outputs, packed,
                                  dec_hid_dim=dec_hid_dim, output_dim=output_dim)
    jax.block_until_ready((pred, h_new))

    pred_ref, h_ref = decoder_reference(inputs, hidden, encoder_outputs, params)
    assert pred.shape == (B, output_dim) and h_new.shape == (B, dec_hid_dim)
    # Tolerance 1e-3: the approximate EUP reciprocal in the softmax introduces a tiny
    # (<~1e-4 relative) uniform scaling of the attention weights; structural bugs would
    # show up as O(1) errors.
    assert jnp.allclose(pred, pred_ref, atol=1e-3, rtol=1e-3), "pred mismatch"
    assert jnp.allclose(h_new, h_ref, atol=1e-3, rtol=1e-3), "hidden mismatch"

    print("KERNEL_OK")
</pallas_src>

<mosaic_0001>
module attributes {stable_mosaic.version = 11 : i64} {
  func.func @decoder_kernel(%arg0: i32, %arg1: memref<8x128xf32, #tpu.memory_space<vmem>>, %arg2: memref<8x128xf32, #tpu.memory_space<vmem>>, %arg3: memref<64x128xf32, #tpu.memory_space<vmem>>, %arg4: memref<128x128xf32, #tpu.memory_space<vmem>>, %arg5: memref<128x128xf32, #tpu.memory_space<vmem>>, %arg6: memref<1x128xf32, #tpu.memory_space<vmem>>, %arg7: memref<1x128xf32, #tpu.memory_space<vmem>>, %arg8: memref<128x384xf32, #tpu.memory_space<vmem>>, %arg9: memref<128x384xf32, #tpu.memory_space<vmem>>, %arg10: memref<1x384xf32, #tpu.memory_space<vmem>>, %arg11: memref<128x384xf32, #tpu.memory_space<vmem>>, %arg12: memref<1x384xf32, #tpu.memory_space<vmem>>, %arg13: memref<128x128xf32, #tpu.memory_space<vmem>>, %arg14: memref<128x128xf32, #tpu.memory_space<vmem>>, %arg15: memref<128x128xf32, #tpu.memory_space<vmem>>, %arg16: memref<1x128xf32, #tpu.memory_space<vmem>>, %arg17: memref<8x128xf32, #tpu.memory_space<vmem>>, %arg18: memref<8x128xf32, #tpu.memory_space<vmem>>) attributes {dimension_semantics = [#tpu.dimension_semantics<parallel>], iteration_bounds = array<i64: 2>, scalar_prefetch = 0 : i64, scratch_operands = 0 : i64, tpu.core_type = #tpu.core_type<tc>, window_params = [{transform_indices = @transform_0, window_bounds = array<i64: 8, 128>}, {transform_indices = @transform_1, window_bounds = array<i64: 8, 128>}, {transform_indices = @transform_2, window_bounds = array<i64: 64, 128>}, {pipeline_mode = #tpu.pipeline_mode<synchronous>, transform_indices = @transform_3, window_bounds = array<i64: 128, 128>}, {pipeline_mode = #tpu.pipeline_mode<synchronous>, transform_indices = @transform_4, window_bounds = array<i64: 128, 128>}, {pipeline_mode = #tpu.pipeline_mode<synchronous>, transform_indices = @transform_5, window_bounds = array<i64: 1, 128>}, {pipeline_mode = #tpu.pipeline_mode<synchronous>, transform_indices = @transform_6, window_bounds = array<i64: 1, 128>}, {pipeline_mode = #tpu.pipeline_mode<synchronous>, transform_indices = @transform_7, window_bounds = array<i64: 128, 384>}, {pipeline_mode = #tpu.pipeline_mode<synchronous>, transform_indices = @transform_8, window_bounds = array<i64: 128, 384>}, {pipeline_mode = #tpu.pipeline_mode<synchronous>, transform_indices = @transform_9, window_bounds = array<i64: 1, 384>}, {pipeline_mode = #tpu.pipeline_mode<synchronous>, transform_indices = @transform_10, window_bounds = array<i64: 128, 384>}, {pipeline_mode = #tpu.pipeline_mode<synchronous>, transform_indices = @transform_11, window_bounds = array<i64: 1, 384>}, {pipeline_mode = #tpu.pipeline_mode<synchronous>, transform_indices = @transform_12, window_bounds = array<i64: 128, 128>}, {pipeline_mode = #tpu.pipeline_mode<synchronous>, transform_indices = @transform_13, window_bounds = array<i64: 128, 128>}, {pipeline_mode = #tpu.pipeline_mode<synchronous>, transform_indices = @transform_14, window_bounds = array<i64: 128, 128>}, {pipeline_mode = #tpu.pipeline_mode<synchronous>, transform_indices = @transform_15, window_bounds = array<i64: 1, 128>}, {transform_indices = @transform_16, window_bounds = array<i64: 8, 128>}, {transform_indices = @transform_17, window_bounds = array<i64: 8, 128>}]} {
    %c0 = arith.constant 0 : index
    %c0_0 = arith.constant 0 : index
    %0 = vector.load %arg1[%c0, %c0_0] : memref<8x128xf32, #tpu.memory_space<vmem>>, vector<8x128xf32>
    %c0_1 = arith.constant 0 : index
    %c0_2 = arith.constant 0 : index
    %1 = vector.load %arg2[%c0_1, %c0_2] : memref<8x128xf32, #tpu.memory_space<vmem>>, vector<8x128xf32>
    %c0_3 = arith.constant 0 : index
    %c0_4 = arith.constant 0 : index
    %2 = vector.load %arg3[%c0_3, %c0_4] : memref<64x128xf32, #tpu.memory_space<vmem>>, vector<64x128xf32>
    %c0_5 = arith.constant 0 : index
    %c0_6 = arith.constant 0 : index
    %3 = vector.load %arg4[%c0_5, %c0_6] : memref<128x128xf32, #tpu.memory_space<vmem>>, vector<128x128xf32>
    %cst = arith.constant dense<0.000000e+00> : vector<64x128xf32>
    %4 = tpu.matmul %2, %3, %cst {dimension_numbers = #tpu.dot_dimension_numbers<[1], [0], [0], [1], [0, 0, 1, 1], [], []>} : vector<64x128xf32>, vector<128x128xf32>, vector<64x128xf32> -> vector<64x128xf32>
    %c0_7 = arith.constant 0 : index
    %c0_8 = arith.constant 0 : index
    %5 = vector.load %arg5[%c0_7, %c0_8] : memref<128x128xf32, #tpu.memory_space<vmem>>, vector<128x128xf32>
    %cst_9 = arith.constant dense<0.000000e+00> : vector<8x128xf32>
    %6 = tpu.matmul %1, %5, %cst_9 {dimension_numbers = #tpu.dot_dimension_numbers<[1], [0], [0], [1], [0, 0, 1, 1], [], []>} : vector<8x128xf32>, vector<128x128xf32>, vector<8x128xf32> -> vector<8x128xf32>
    %7 = vector.shape_cast %4 : vector<64x128xf32> to vector<8x8x128xf32>
    %8 = vector.shape_cast %6 : vector<8x128xf32> to vector<8x1x128xf32>
    %9 = vector.broadcast %8 : vector<8x1x128xf32> to vector<8x8x128xf32>
    %10 = arith.addf %7, %9 : vector<8x8x128xf32>
    %c0_10 = arith.constant 0 : index
    %c0_11 = arith.constant 0 : index
    %11 = vector.load %arg6[%c0_10, %c0_11] : memref<1x128xf32, #tpu.memory_space<vmem>>, vector<1x128xf32>
    %12 = vector.shape_cast %11 : vector<1x128xf32> to vector<1x1x128xf32>
    %13 = vector.broadcast %12 : vector<1x1x128xf32> to vector<8x8x128xf32>
    %14 = arith.addf %10, %13 : vector<8x8x128xf32>
    %15 = math.tanh %14 : vector<8x8x128xf32>
    %c0_12 = arith.constant 0 : index
    %c0_13 = arith.constant 0 : index
    %16 = vector.load %arg7[%c0_12, %c0_13] : memref<1x128xf32, #tpu.memory_space<vmem>>, vector<1x128xf32>
    %17 = vector.shape_cast %16 : vector<1x128xf32> to vector<1x1x128xf32>
    %18 = vector.broadcast %17 : vector<1x1x128xf32> to vector<8x8x128xf32>
    %19 = arith.mulf %15, %18 : vector<8x8x128xf32>
    %cst_14 = arith.constant dense<0.000000e+00> : vector<8x8xf32>
    %20 = vector.multi_reduction <add>, %19, %cst_14 [2] : vector<8x8x128xf32> to vector<8x8xf32>
    %cst_15 = arith.constant dense<0xFF800000> : vector<8xf32>
    %21 = vector.multi_reduction <maximumf>, %20, %cst_15 [1] : vector<8x8xf32> to vector<8xf32>
    %22 = vector.shape_cast %21 : vector<8xf32> to vector<8x1xf32>
    %23 = vector.broadcast %22 : vector<8x1xf32> to vector<8x8xf32>
    %24 = arith.subf %20, %23 : vector<8x8xf32>
    %25 = math.exp %24 : vector<8x8xf32>
    %cst_16 = arith.constant dense<0.000000e+00> : vector<8xf32>
    %26 = vector.multi_reduction <add>, %25, %cst_16 [1] : vector<8x8xf32> to vector<8xf32>
    %27 = vector.shape_cast %26 : vector<8xf32> to vector<8x1xf32>
    %28 = tpu.reciprocal %27 {approx = true} : vector<8x1xf32> -> vector<8x1xf32>
    %29 = vector.broadcast %28 : vector<8x1xf32> to vector<8x8xf32>
    %30 = arith.mulf %25, %29 : vector<8x8xf32>
    %31 = vector.shape_cast %2 : vector<64x128xf32> to vector<8x8x128xf32>
    %32 = vector.shape_cast %30 : vector<8x8xf32> to vector<8x1x8xf32>
    "tpu.trace_start"() <{level = 10 : i32, message = "bqs,bsd->bqd"}> : () -> ()
    %cst_17 = arith.constant dense<0.000000e+00> : vector<8x1x128xf32>
    %33 = tpu.matmul %32, %31, %cst_17 {dimension_numbers = #tpu.dot_dimension_numbers<[2], [1], [1], [2], [0, 0, 0, 1, 1, 2], [0], [0]>} : vector<8x1x8xf32>, vector<8x8x128xf32>, vector<8x1x128xf32> -> vector<8x1x128xf32>
    "tpu.trace_stop"() : () -> ()
    %34 = vector.shape_cast %33 : vector<8x1x128xf32> to vector<8x128xf32>
    %c0_18 = arith.constant 0 : index
    %c0_19 = arith.constant 0 : index
    %35 = vector.load %arg8[%c0_18, %c0_19] : memref<128x384xf32, #tpu.memory_space<vmem>>, vector<128x384xf32>
    %cst_20 = arith.constant dense<0.000000e+00> : vector<8x384xf32>
    %36 = tpu.matmul %0, %35, %cst_20 {dimension_numbers = #tpu.dot_dimension_numbers<[1], [0], [0], [1], [0, 0, 1, 1], [], []>} : vector<8x128xf32>, vector<128x384xf32>, vector<8x384xf32> -> vector<8x384xf32>
    %c0_21 = arith.constant 0 : index
    %c0_22 = arith.constant 0 : index
    %37 = vector.load %arg9[%c0_21, %c0_22] : memref<128x384xf32, #tpu.memory_space<vmem>>, vector<128x384xf32>
    %cst_23 = arith.constant dense<0.000000e+00> : vector<8x384xf32>
    %38 = tpu.matmul %34, %37, %cst_23 {dimension_numbers = #tpu.dot_dimension_numbers<[1], [0], [0], [1], [0, 0, 1, 1], [], []>} : vector<8x128xf32>, vector<128x384xf32>, vector<8x384xf32> -> vector<8x384xf32>
    %39 = arith.addf %36, %38 : vector<8x384xf32>
    %c0_24 = arith.constant 0 : index
    %c0_25 = arith.constant 0 : index
    %40 = vector.load %arg10[%c0_24, %c0_25] : memref<1x384xf32, #tpu.memory_space<vmem>>, vector<1x384xf32>
    %41 = vector.broadcast %40 : vector<1x384xf32> to vector<8x384xf32>
    %42 = arith.addf %39, %41 : vector<8x384xf32>
    %c0_26 = arith.constant 0 : index
    %c0_27 = arith.constant 0 : index
    %43 = vector.load %arg11[%c0_26, %c0_27] : memref<128x384xf32, #tpu.memory_space<vmem>>, vector<128x384xf32>
    %cst_28 = arith.constant dense<0.000000e+00> : vector<8x384xf32>
    %44 = tpu.matmul %1, %43, %cst_28 {dimension_numbers = #tpu.dot_dimension_numbers<[1], [0], [0], [1], [0, 0, 1, 1], [], []>} : vector<8x128xf32>, vector<128x384xf32>, vector<8x384xf32> -> vector<8x384xf32>
    %c0_29 = arith.constant 0 : index
    %c0_30 = arith.constant 0 : index
    %45 = vector.load %arg12[%c0_29, %c0_30] : memref<1x384xf32, #tpu.memory_space<vmem>>, vector<1x384xf32>
    %46 = vector.broadcast %45 : vector<1x384xf32> to vector<8x384xf32>
    %47 = arith.addf %44, %46 : vector<8x384xf32>
    %48 = vector.extract_strided_slice %42 {offsets = [0, 0], sizes = [8, 128], strides = [1, 1]} : vector<8x384xf32> to vector<8x128xf32>
    %49 = vector.extract_strided_slice %47 {offsets = [0, 0], sizes = [8, 128], strides = [1, 1]} : vector<8x384xf32> to vector<8x128xf32>
    %50 = arith.addf %48, %49 : vector<8x128xf32>
    %51 = arith.negf %50 : vector<8x128xf32>
    %52 = math.exp %51 : vector<8x128xf32>
    %cst_31 = arith.constant 1.000000e+00 : f32
    %53 = vector.broadcast %cst_31 : f32 to vector<8x128xf32>
    %54 = arith.addf %53, %52 : vector<8x128xf32>
    %55 = arith.divf %53, %54 : vector<8x128xf32>
    %56 = vector.extract_strided_slice %42 {offsets = [0, 128], sizes = [8, 128], strides = [1, 1]} : vector<8x384xf32> to vector<8x128xf32>
    %57 = vector.extract_strided_slice %47 {offsets = [0, 128], sizes = [8, 128], strides = [1, 1]} : vector<8x384xf32> to vector<8x128xf32>
    %58 = arith.addf %56, %57 : vector<8x128xf32>
    %59 = arith.negf %58 : vector<8x128xf32>
    %60 = math.exp %59 : vector<8x128xf32>
    %cst_32 = arith.constant 1.000000e+00 : f32
    %61 = vector.broadcast %cst_32 : f32 to vector<8x128xf32>
    %62 = arith.addf %61, %60 : vector<8x128xf32>
    %63 = arith.divf %61, %62 : vector<8x128xf32>
    %64 = vector.extract_strided_slice %42 {offsets = [0, 256], sizes = [8, 128], strides = [1, 1]} : vector<8x384xf32> to vector<8x128xf32>
    %65 = vector.extract_strided_slice %47 {offsets = [0, 256], sizes = [8, 128], strides = [1, 1]} : vector<8x384xf32> to vector<8x128xf32>
    %66 = arith.mulf %55, %65 : vector<8x128xf32>
    %67 = arith.addf %64, %66 : vector<8x128xf32>
    %68 = math.tanh %67 : vector<8x128xf32>
    %cst_33 = arith.constant 1.000000e+00 : f32
    %69 = vector.broadcast %cst_33 : f32 to vector<8x128xf32>
    %70 = arith.subf %69, %63 : vector<8x128xf32>
    %71 = arith.mulf %70, %68 : vector<8x128xf32>
    %72 = arith.mulf %63, %1 : vector<8x128xf32>
    %73 = arith.addf %71, %72 : vector<8x128xf32>
    %c0_34 = arith.constant 0 : index
    %c0_35 = arith.constant 0 : index
    %74 = vector.load %arg13[%c0_34, %c0_35] : memref<128x128xf32, #tpu.memory_space<vmem>>, vector<128x128xf32>
    %cst_36 = arith.constant dense<0.000000e+00> : vector<8x128xf32>
    %75 = tpu.matmul %73, %74, %cst_36 {dimension_numbers = #tpu.dot_dimension_numbers<[1], [0], [0], [1], [0, 0, 1, 1], [], []>} : vector<8x128xf32>, vector<128x128xf32>, vector<8x128xf32> -> vector<8x128xf32>
    %c0_37 = arith.constant 0 : index
    %c0_38 = arith.constant 0 : index
    %76 = vector.load %arg14[%c0_37, %c0_38] : memref<128x128xf32, #tpu.memory_space<vmem>>, vector<128x128xf32>
    %cst_39 = arith.constant dense<0.000000e+00> : vector<8x128xf32>
    %77 = tpu.matmul %34, %76, %cst_39 {dimension_numbers = #tpu.dot_dimension_numbers<[1], [0], [0], [1], [0, 0, 1, 1], [], []>} : vector<8x128xf32>, vector<128x128xf32>, vector<8x128xf32> -> vector<8x128xf32>
    %78 = arith.addf %75, %77 : vector<8x128xf32>
    %c0_40 = arith.constant 0 : index
    %c0_41 = arith.constant 0 : index
    %79 = vector.load %arg15[%c0_40, %c0_41] : memref<128x128xf32, #tpu.memory_space<vmem>>, vector<128x128xf32>
    %cst_42 = arith.constant dense<0.000000e+00> : vector<8x128xf32>
    %80 = tpu.matmul %0, %79, %cst_42 {dimension_numbers = #tpu.dot_dimension_numbers<[1], [0], [0], [1], [0, 0, 1, 1], [], []>} : vector<8x128xf32>, vector<128x128xf32>, vector<8x128xf32> -> vector<8x128xf32>
    %81 = arith.addf %78, %80 : vector<8x128xf32>
    %c0_43 = arith.constant 0 : index
    %c0_44 = arith.constant 0 : index
    %82 = vector.load %arg16[%c0_43, %c0_44] : memref<1x128xf32, #tpu.memory_space<vmem>>, vector<1x128xf32>
    %83 = vector.broadcast %82 : vector<1x128xf32> to vector<8x128xf32>
    %84 = arith.addf %81, %83 : vector<8x128xf32>
    %c0_45 = arith.constant 0 : index
    %c0_46 = arith.constant 0 : index
    %85 = vector.load %arg17[%c0_45, %c0_46] : memref<8x128xf32, #tpu.memory_space<vmem>>, vector<8x128xf32>
    tpu.vector_store %arg17[%c0_45, %c0_46], %84 {strides = array<i32>} : memref<8x128xf32, #tpu.memory_space<vmem>>, vector<8x128xf32>,
    %c0_47 = arith.constant 0 : index
    %c0_48 = arith.constant 0 : index
    %86 = vector.load %arg18[%c0_47, %c0_48] : memref<8x128xf32, #tpu.memory_space<vmem>>, vector<8x128xf32>
    tpu.vector_store %arg18[%c0_47, %c0_48], %73 {strides = array<i32>} : memref<8x128xf32, #tpu.memory_space<vmem>>, vector<8x128xf32>,
    return
  }
  func.func @transform_0(%arg0: i32) -> (i32, i32) {
    %c0_i32 = arith.constant 0 : i32
    %c0_i32_0 = arith.constant 0 : i32
    return %arg0, %c0_i32 : i32, i32
  }
  func.func @transform_1(%arg0: i32) -> (i32, i32) {
    %c0_i32 = arith.constant 0 : i32
    %c0_i32_0 = arith.constant 0 : i32
    return %arg0, %c0_i32 : i32, i32
  }
  func.func @transform_2(%arg0: i32) -> (i32, i32) {
    %c0_i32 = arith.constant 0 : i32
    %c0_i32_0 = arith.constant 0 : i32
    return %arg0, %c0_i32 : i32, i32
  }
  func.func @transform_3(%arg0: i32) -> (i32, i32) {
    %c0_i32 = arith.constant 0 : i32
    %c0_i32_0 = arith.constant 0 : i32
    %c0_i32_1 = arith.constant 0 : i32
    return %c0_i32, %c0_i32_0 : i32, i32
  }
  func.func @transform_4(%arg0: i32) -> (i32, i32) {
    %c0_i32 = arith.constant 0 : i32
    %c0_i32_0 = arith.constant 0 : i32
    %c0_i32_1 = arith.constant 0 : i32
    return %c0_i32, %c0_i32_0 : i32, i32
  }
  func.func @transform_5(%arg0: i32) -> (i32, i32) {
    %c0_i32 = arith.constant 0 : i32
    %c0_i32_0 = arith.constant 0 : i32
    %c0_i32_1 = arith.constant 0 : i32
    return %c0_i32, %c0_i32_0 : i32, i32
  }
  func.func @transform_6(%arg0: i32) -> (i32, i32) {
    %c0_i32 = arith.constant 0 : i32
    %c0_i32_0 = arith.constant 0 : i32
    %c0_i32_1 = arith.constant 0 : i32
    return %c0_i32, %c0_i32_0 : i32, i32
  }
  func.func @transform_7(%arg0: i32) -> (i32, i32) {
    %c0_i32 = arith.constant 0 : i32
    %c0_i32_0 = arith.constant 0 : i32
    %c0_i32_1 = arith.constant 0 : i32
    return %c0_i32, %c0_i32_0 : i32, i32
  }
  func.func @transform_8(%arg0: i32) -> (i32, i32) {
    %c0_i32 = arith.constant 0 : i32
    %c0_i32_0 = arith.constant 0 : i32
    %c0_i32_1 = arith.constant 0 : i32
    return %c0_i32, %c0_i32_0 : i32, i32
  }
  func.func @transform_9(%arg0: i32) -> (i32, i32) {
    %c0_i32 = arith.constant 0 : i32
    %c0_i32_0 = arith.constant 0 : i32
    %c0_i32_1 = arith.constant 0 : i32
    return %c0_i32, %c0_i32_0 : i32, i32
  }
  func.func @transform_10(%arg0: i32) -> (i32, i32) {
    %c0_i32 = arith.constant 0 : i32
    %c0_i32_0 = arith.constant 0 : i32
    %c0_i32_1 = arith.constant 0 : i32
    return %c0_i32, %c0_i32_0 : i32, i32
  }
  func.func @transform_11(%arg0: i32) -> (i32, i32) {
    %c0_i32 = arith.constant 0 : i32
    %c0_i32_0 = arith.constant 0 : i32
    %c0_i32_1 = arith.constant 0 : i32
    return %c0_i32, %c0_i32_0 : i32, i32
  }
  func.func @transform_12(%arg0: i32) -> (i32, i32) {
    %c0_i32 = arith.constant 0 : i32
    %c0_i32_0 = arith.constant 0 : i32
    %c0_i32_1 = arith.constant 0 : i32
    return %c0_i32, %c0_i32_0 : i32, i32
  }
  func.func @transform_13(%arg0: i32) -> (i32, i32) {
    %c0_i32 = arith.constant 0 : i32
    %c0_i32_0 = arith.constant 0 : i32
    %c0_i32_1 = arith.constant 0 : i32
    return %c0_i32, %c0_i32_0 : i32, i32
  }
  func.func @transform_14(%arg0: i32) -> (i32, i32) {
    %c0_i32 = arith.constant 0 : i32
    %c0_i32_0 = arith.constant 0 : i32
    %c0_i32_1 = arith.constant 0 : i32
    return %c0_i32, %c0_i32_0 : i32, i32
  }
  func.func @transform_15(%arg0: i32) -> (i32, i32) {
    %c0_i32 = arith.constant 0 : i32
    %c0_i32_0 = arith.constant 0 : i32
    %c0_i32_1 = arith.constant 0 : i32
    return %c0_i32, %c0_i32_0 : i32, i32
  }
  func.func @transform_16(%arg0: i32) -> (i32, i32) {
    %c0_i32 = arith.constant 0 : i32
    %c0_i32_0 = arith.constant 0 : i32
    return %arg0, %c0_i32 : i32, i32
  }
  func.func @transform_17(%arg0: i32) -> (i32, i32) {
    %c0_i32 = arith.constant 0 : i32
    %c0_i32_0 = arith.constant 0 : i32
    return %arg0, %c0_i32 : i32, i32
  }
}

</mosaic_0001>

<bundles_post_ra>
// kernel: decoder_forward.1
= control target key start
LH: loop header
LB: loop body
LE: loop exit
PB: predicated region body
PF: predicated region fallthrough
CT: control target
= control target key end

     0   :  { %s5237_s0 = inlined_call_operand.vmem [shape: f32[16,128], index: 0, kind: input, shape index: {}]   ;;  %s5238_s1 = inlined_call_operand.vmem [shape: f32[16,128], index: 1, kind: input, shape index: {}]   ;;  %s5239_s2 = inlined_call_operand.vmem [shape: f32[128,128], index: 2, kind: input, shape index: {}]   ;;  %s5240_s3 = inlined_call_operand.vmem [shape: f32[128,128], index: 3, kind: input, shape index: {}]   ;;  %s5241_s4 = inlined_call_operand.hbm [shape: f32[128,128], index: 4, kind: input, shape index: {}]   ;;  %s5242_s5 = inlined_call_operand.vmem [shape: f32[1,128], index: 5, kind: input, shape index: {}]   ;;  %s5243_s6 = inlined_call_operand.vmem [shape: f32[1,128], index: 6, kind: input, shape index: {}]   ;;  %s5244_s7 = inlined_call_operand.vmem [shape: f32[128,384], index: 7, kind: input, shape index: {}]   ;;  %s5245_s8 = inlined_call_operand.hbm [shape: f32[128,384], index: 8, kind: input, shape index: {}]   ;;  %s5246_s9 = inlined_call_operand.vmem [shape: f32[1,384], index: 9, kind: input, shape index: {}]   ;;  %s5247_s10 = inlined_call_operand.hbm [shape: f32[128,384], index: 10, kind: input, shape index: {}]   ;;  %s5248_s11 = inlined_call_operand.vmem [shape: f32[1,384], index: 11, kind: input, shape index: {}]   ;;  %s5249_s12 = inlined_call_operand.hbm [shape: f32[128,128], index: 12, kind: input, shape index: {}]   ;;  %s5250_s13 = inlined_call_operand.hbm [shape: f32[128,128], index: 13, kind: input, shape index: {}]   ;;  %s5251_s14 = inlined_call_operand.hbm [shape: f32[128,128], index: 14, kind: input, shape index: {}]   ;;  %s5252_s15 = inlined_call_operand.vmem [shape: f32[1,128], index: 15, kind: input, shape index: {}]   ;;  %s5253_s16 = inlined_call_operand.hbm [shape: f32[16,128], index: 16, kind: output, shape index: {0}]   ;;  %s5254_s17 = inlined_call_operand.hbm [shape: f32[16,128], index: 17, kind: output, shape index: {1}]  }
   0x1   :  { %5271 = sst [smem:[#allocation30_spill]] %s5237_s0 }
   0x2   :  { %5272 = sst [smem:[#allocation31_spill]] %s5238_s1 }
   0x3   :  { %5273 = sst [smem:[#allocation32_spill]] %s5246_s9 }
   0x4   :  { %5274 = sst [smem:[#allocation33_spill]] %s5252_s15 }
   0x5   :  { %5275 = sst [smem:[#allocation34_spill]] %s5253_s16 }
   0x6   :  { %5276 = sst [smem:[#allocation35_spill]] %s5254_s17 }
   0x7   :  { %23 = vsyncpa [#allocation3], 0 }
   0x8   :  { %24 = vsyncpa [#allocation6], 0 }
   0x9   :  { %25 = vsyncpa [#allocation9], 0 }
   0xa   :  { %26 = vsyncpa [#allocation12], 0 }
   0xb   :  { %27 = vsyncpa [#allocation4], 0 }
   0xc   :  { %29 = vsyncpa [#allocation4 + $0x1], 0 }
   0xd   :  { %30 = vsyncpa [#allocation15], 0 }
   0xe   :  { %32 = vsyncpa [#allocation15 + $0x1], 0  ;;  %s4447_s24 = smov 0   ;;  %s4449_s25 = smov 0  }
   0xf   :  { %s4451_s26 = smov 0   ;;  %s4453_s27 = smov 0  }
  0x10 LB: > { %5277 = sst [smem:[#allocation22_spill]] %s4326_s24  ;;  %s4468_s28 = sadd.s32 4294967295, %s4338_s27   ;;  %s4338_s27 = sphi %s4453_s27, %s5314_s27   ;;  %s4334_s26 = sphi %s4451_s26, %s5317_s26   ;;  %s4330_s25 = sphi %s4449_s25, %s5316_s25   ;;  %s4326_s24 = sphi %s4447_s24, %s5315_s24  }
  0x11   : > { %5278 = sst [smem:[#allocation23_spill]] %s4330_s25  ;;  %s3066_s29 = sadd.s32 4294967294, %s4338_s27  }
  0x12   : > { %5279 = sst [smem:[#allocation24_spill]] %s4334_s26  ;;  %s4472_s0 = sadd.s32 1, %s4338_s27  }
  0x13   : > { %5280 = sst [smem:[#allocation25_spill]] %s4338_s27  ;;  %s396_s30 = sadd.s32 1, %s4334_s26 }
  0x14   : > { %5281 = sst [smem:[#allocation26_spill]] %s4472_s0  ;;  %s393_s18 = ssub.s32 %s4338_s27, %s4472_s0 }
  0x15   : > { %p406_p0 = scmp.ne.s32.totalorder %s4334_s26, %s4330_s25  ;;  %p394_p1 = scmp.eq.s32.totalorder %s393_s18, 0 }
  0x16   : > { %p407_p2 = scmp.eq.s32.totalorder %s4468_s28, 1  ;;  %p412_p3 = scmp.ne.s32.totalorder %s4330_s25, %s4326_s24 }
  0x17   : > { %p413_p4 = scmp.eq.s32.totalorder %s3066_s29, 1  ;;  %p3067_p7 = scmp.ge.s32.totalorder %s4338_s27, 1 }
  0x18   : > { %s4483_s19 = scalar_select %p394_p1, %s4334_s26, %s396_s30  }
  0x19   : > { %p4485_p5 = por %p407_p2, %p406_p0  ;;  %p4489_p6 = por %p413_p4, %p412_p3 }
  0x1a   : > { %5282 = sst [smem:[#allocation27_spill]] %s4483_s19  ;;  %p446_p8 = scmp.lt.s32.totalorder %s4338_s27, 3 }
  0x1b   : > { %s5283_s1 = scalar_select %p4485_p5, 1, 0 }
  0x1c   : > { %s5285_s20 = scalar_select %p4489_p6, 1, 0 }
  0x1d   : > { %5284 = sst [smem:[#allocation28_spill]] %s5283_s1  ;;  %p5262_p9 = scmp.eq.s32.totalorder %s4468_s28, 0 }
  0x1e   : > { %5286 = sst [smem:[#allocation29_spill]] %s5285_s20  ;;  %p4496_p10 = pnand %p3067_p7, %p446_p8 }
  0x1f   : > { %s4340_s22 = smov [#allocation5]   ;;  %s4341_s30 = smov [#allocation8]  }
  0x20   : > { %s5287_s21 = scalar_select %p4496_p10, 1, 0 }
  0x21   : > { %s483_s23 = sshll.u32 %s4340_s22, 4  ;;  %p3927_p11 = pneg %p4496_p10  ;;  %s484_s23 = int_to_ptr.vmem [resolvable:$true] %s483_s23 }
  0x22   : > { %s515_s18 = sshll.u32 %s4341_s30, 4  ;;  %s4060_s0 = scalar_lea.hbm %s5245_s8, 6144  ;;  %s516_s18 = int_to_ptr.vmem [resolvable:$true] %s515_s18 }
  0x23   : > { %p4504_p12 = pnand %p5262_p9, %p3927_p11  ;;  %p4061_p13 = scmp.ne.s32.totalorder %s5245_s8, %s4060_s0 }
  0x24   : > { %p4067_p3 = scmp.lt.u32.totalorder %s4060_s0, %s5245_s8 }
  0x25   : > { %p4516_p0 = pneg %p4504_p12 }
  0x27   : > { %p4063_p1 = pnand %p4516_p0, %p4061_p13 }
  0x29   : > { %p4064_p2 = pneg %p4063_p1 }
  0x2b   : > { %p4069_p4 = pnand %p4067_p3, %p4064_p2 }
  0x2d   : > { %4072 = shalt.err (!%p4069_p4)
}
  0x2e   : > { %s4073_s26 = scalar_lea.vmem %s484_s23, 6144  ;;  %p4081_p9 = scmp.lt.s32.totalorder %s484_s23, %s484_s23 }
  0x2f   : > { %p4074_p7 = scmp.ne.s32.totalorder %s484_s23, %s4073_s26  ;;  %p4082_p6 = scmp.lt.s32.totalorder %s4073_s26, %s4073_s26 }
  0x31   : > { %p4076_p8 = pnand %p4074_p7, %p4516_p0  ;;  %p4083_p5 = por %p4082_p6, %p4081_p9 }
  0x33   : > { %p4077_p11 = pneg %p4076_p8 }
  0x35   : > { %p4084_p10 = pnand %p4083_p5, %p4077_p11 }
  0x37   : > { %4087 = shalt.err (!%p4084_p10)
}
  0x38   : > { %s5269_s24 = smov 384   ;;  %s5270_s19 = smov 24  }
  0x39   : > { %3933 = dma.hbm_to_vmem [thread:$0]  (!%p4504_p12), %s5245_s8, 6144, %s484_s23, [#allocation6], %s5269_s24, %s5269_s24, %s5270_s19  }
  0x3a   : > { %s4344_s0 = smov [#allocation2]   ;;  %s4088_s15 = scalar_lea.hbm %s5249_s12, 2048 }
  0x3b   : > { %s461_s20 = sshll.u32 %s4344_s0, 4  ;;  %p4089_p5 = scmp.ne.s32.totalorder %s5249_s12, %s4088_s15  ;;  %s462_s20 = int_to_ptr.vmem [resolvable:$true] %s461_s20 }
  0x3c   : > { %p4095_p10 = scmp.lt.u32.totalorder %s4088_s15, %s5249_s12 }
  0x3d   : > { %p4091_p6 = pnand %p4089_p5, %p4516_p0 }
  0x3f   : > { %p4092_p9 = pneg %p4091_p6 }
  0x41   : > { %p4097_p13 = pnand %p4095_p10, %p4092_p9 }
  0x43   : > { %4100 = shalt.err (!%p4097_p13)
}
  0x44   : > { %s4101_s23 = scalar_lea.vmem %s516_s18, 2048  ;;  %p4109_p4 = scmp.lt.s32.totalorder %s516_s18, %s516_s18 }
  0x45   : > { %p4102_p1 = scmp.ne.s32.totalorder %s516_s18, %s4101_s23  ;;  %p4110_p7 = scmp.lt.s32.totalorder %s4101_s23, %s4101_s23 }
  0x47   : > { %p4104_p2 = pnand %p4102_p1, %p4516_p0  ;;  %p4111_p8 = por %p4110_p7, %p4109_p4 }
  0x49   : > { %p4105_p3 = pneg %p4104_p2 }
  0x4b   : > { %p4112_p11 = pnand %p4111_p8, %p4105_p3 }
  0x4d   : > { %4115 = shalt.err (!%p4112_p11)
}
  0x4e   : > { %s4345_s17 = smov 128   ;;  %s4346_s1 = smov 8  }
  0x4f   : > { %3939 = dma.hbm_to_vmem [thread:$0]  (!%p4504_p12), %s5249_s12, 2048, %s516_s18, [#allocation9], %s4345_s17, %s4345_s17, %s4346_s1  }
  0x50   : > { %s4116_s27 = scalar_lea.hbm %s5241_s4, 2048 }
  0x51   : > { %p4117_p5 = scmp.ne.s32.totalorder %s5241_s4, %s4116_s27  ;;  %p4123_p10 = scmp.lt.u32.totalorder %s4116_s27, %s5241_s4 }
  0x53   : > { %p4119_p6 = pnand %p4117_p5, %p4516_p0 }
  0x55   : > { %p4120_p9 = pneg %p4119_p6 }
  0x57   : > { %p4125_p13 = pnand %p4123_p10, %p4120_p9 }
  0x59   : > { %4128 = shalt.err (!%p4125_p13)
}
  0x5a   : > { %s4129_s9 = scalar_lea.vmem %s462_s20, 2048  ;;  %p4137_p4 = scmp.lt.s32.totalorder %s462_s20, %s462_s20 }
  0x5b   : > { %p4130_p1 = scmp.ne.s32.totalorder %s462_s20, %s4129_s9  ;;  %p4138_p7 = scmp.lt.s32.totalorder %s4129_s9, %s4129_s9 }
  0x5d   : > { %p4132_p2 = pnand %p4130_p1, %p4516_p0  ;;  %p4139_p8 = por %p4138_p7, %p4137_p4 }
  0x5f   : > { %p4133_p3 = pneg %p4132_p2 }
  0x61   : > { %p4140_p11 = pnand %p4139_p8, %p4133_p3 }
  0x63   : > { %4143 = shalt.err (!%p4140_p11)
}
  0x64   : > { %3930 = dma.hbm_to_vmem [thread:$0]  (!%p4504_p12), %s5241_s4, 2048, %s462_s20, [#allocation3], %s4345_s17, %s4345_s17, %s4346_s1  }
  0x65   : > { %s4347_s25 = smov [#allocation7]   ;;  %s4348_s27 = smov [#allocation10]  }
  0x66   : > { %s499_s16 = sshll.u32 %s4347_s25, 4  ;;  %s528_s0 = sshll.u32 %s4348_s27, 4  ;;  %s500_s16 = int_to_ptr.vmem [resolvable:$true] %s499_s16  ;;  %s529_s0 = int_to_ptr.vmem [resolvable:$true] %s528_s0 }
  0x67   : > { %s4144_s23 = scalar_lea.hbm %s5247_s10, 6144 }
  0x68   : > { %p4145_p5 = scmp.ne.s32.totalorder %s5247_s10, %s4144_s23  ;;  %p4151_p10 = scmp.lt.u32.totalorder %s4144_s23, %s5247_s10 }
  0x6a   : > { %p4147_p6 = pnand %p4145_p5, %p4516_p0 }
  0x6c   : > { %p4148_p9 = pneg %p4147_p6 }
  0x6e   : > { %p4153_p13 = pnand %p4151_p10, %p4148_p9 }
  0x70   : > { %4156 = shalt.err (!%p4153_p13)
}
  0x71   : > { %s4157_s20 = scalar_lea.vmem %s500_s16, 6144  ;;  %p4165_p4 = scmp.lt.s32.totalorder %s500_s16, %s500_s16 }
  0x72   : > { %p4158_p1 = scmp.ne.s32.totalorder %s500_s16, %s4157_s20  ;;  %p4166_p7 = scmp.lt.s32.totalorder %s4157_s20, %s4157_s20 }
  0x74   : > { %p4160_p2 = pnand %p4158_p1, %p4516_p0  ;;  %p4167_p8 = por %p4166_p7, %p4165_p4 }
  0x76   : > { %p4161_p3 = pneg %p4160_p2 }
  0x78   : > { %p4168_p11 = pnand %p4167_p8, %p4161_p3 }
  0x7a   : > { %4171 = shalt.err (!%p4168_p11)
}
  0x7b   : > { %s5290_s24 = smov 24   ;;  %s5291_s15 = smov 384  }
  0x7c   : > { %3936 = dma.hbm_to_vmem [thread:$0]  (!%p4504_p12), %s5247_s10, 6144, %s500_s16, [#allocation6], %s5291_s15, %s5291_s15, %s5290_s24  }
  0x7d   : > { %s4172_s26 = scalar_lea.hbm %s5250_s13, 2048 }
  0x7e   : > { %p4173_p5 = scmp.ne.s32.totalorder %s5250_s13, %s4172_s26  ;;  %p4179_p10 = scmp.lt.u32.totalorder %s4172_s26, %s5250_s13 }
  0x80   : > { %p4175_p6 = pnand %p4173_p5, %p4516_p0 }
  0x82   : > { %p4176_p9 = pneg %p4175_p6 }
  0x84   : > { %p4181_p13 = pnand %p4179_p10, %p4176_p9 }
  0x86   : > { %4184 = shalt.err (!%p4181_p13)
}
  0x87   : > { %s4185_s19 = scalar_lea.vmem %s529_s0, 2048  ;;  %p4193_p4 = scmp.lt.s32.totalorder %s529_s0, %s529_s0 }
  0x88   : > { %p4186_p1 = scmp.ne.s32.totalorder %s529_s0, %s4185_s19  ;;  %p4194_p7 = scmp.lt.s32.totalorder %s4185_s19, %s4185_s19 }
  0x8a   : > { %p4188_p2 = pnand %p4186_p1, %p4516_p0  ;;  %p4195_p8 = por %p4194_p7, %p4193_p4 }
  0x8c   : > { %p4189_p3 = pneg %p4188_p2 }
  0x8e   : > { %p4196_p11 = pnand %p4195_p8, %p4189_p3 }
  0x90   : > { %4199 = shalt.err (!%p4196_p11)
}
  0x91   : > { %3942 = dma.hbm_to_vmem [thread:$0]  (!%p4504_p12), %s5250_s13, 2048, %s529_s0, [#allocation9], %s4345_s17, %s4345_s17, %s4346_s1  }
  0x92   : > { %s4349_s15 = smov [#allocation11]   ;;  %s4200_s26 = scalar_lea.hbm %s5251_s14, 2048 }
  0x93   : > { %s541_s25 = sshll.u32 %s4349_s15, 4  ;;  %p4201_p5 = scmp.ne.s32.totalorder %s5251_s14, %s4200_s26  ;;  %s542_s25 = int_to_ptr.vmem [resolvable:$true] %s541_s25 }
  0x94   : > { %p4207_p10 = scmp.lt.u32.totalorder %s4200_s26, %s5251_s14 }
  0x95   : > { %p4203_p6 = pnand %p4201_p5, %p4516_p0 }
  0x97   : > { %p4204_p9 = pneg %p4203_p6 }
  0x99   : > { %p4209_p13 = pnand %p4207_p10, %p4204_p9 }
  0x9b   : > { %4212 = shalt.err (!%p4209_p13)
}
  0x9c   : > { %s4213_s0 = scalar_lea.vmem %s542_s25, 2048  ;;  %p4221_p4 = scmp.lt.s32.totalorder %s542_s25, %s542_s25 }
  0x9d   : > { %p4214_p1 = scmp.ne.s32.totalorder %s542_s25, %s4213_s0  ;;  %p4222_p7 = scmp.lt.s32.totalorder %s4213_s0, %s4213_s0 }
  0x9f   : > { %p4216_p2 = pnand %p4214_p1, %p4516_p0  ;;  %p4223_p8 = por %p4222_p7, %p4221_p4 }
  0xa1   : > { %p4217_p3 = pneg %p4216_p2 }
  0xa3   : > { %p4224_p11 = pnand %p4223_p8, %p4217_p3 }
  0xa5   : > { %4227 = shalt.err (!%p4224_p11)
}
  0xa6   : > { %3945 = dma.hbm_to_vmem [thread:$0]  (!%p4504_p12), %s5251_s14, 2048, %s542_s25, [#allocation12], %s4345_s17, %s4345_s17, %s4346_s1  }
  0xa7   : > { %p5292_p5 = scmp.ne.s32.totalorder %s5287_s21, 0 }
  0xa8   : > { %p5293_p0 = scmp.eq.s32.totalorder (!%p5292_p5), %s4468_s28, 0 }
  0xa9   : > { %583 = sbr.rel (%p5292_p5) target bundleno = 2050 (0x802), region = 84 }
  0xb0   : > { %4301 = dma.done.wait (%p5293_p0), [#allocation3], 2048   ;;  %p5294_p6 = pmov %p5293_p0 }
  0xb1   : > { %p5295_p9 = pmov %p5293_p0 }
  0xb2   : > { %4303 = vsyncadd (%p5294_p6), [#allocation3], 4294965248 }
  0xb3   : > { %4305 = dma.done.wait (%p5295_p9), [#allocation6], 12288   ;;  %p5296_p10 = pmov %p5293_p0 }
  0xb4   : > { %p5297_p13 = pmov %p5293_p0 }
  0xb5   : > { %4307 = vsyncadd (%p5296_p10), [#allocation6], 4294955008 }
  0xb6   : > { %4309 = dma.done.wait (%p5297_p13), [#allocation9], 4096   ;;  %p5298_p12 = pmov %p5293_p0 }
  0xb7   : > { %p5299_p1 = pmov %p5293_p0 }
  0xb8   : > { %4311 = vsyncadd (%p5298_p12), [#allocation9], 4294963200 }
  0xb9   : > { %4313 = dma.done.wait (%p5299_p1), [#allocation12], 2048   ;;  %p5300_p2 = pmov %p5293_p0 }
  0xba   : > { %s3086_s21 = sshll.u32 %s4468_s28, 3  ;;  %v4350_v0 = vmov 0.0   ;;  %vm4351_vm0 = vmmov 0   ;;  %v692_v1 = vld [vmem:[%s5240_s3] sm:$0xff]  ;;  %v693_v2 = vld [vmem:[%s5240_s3 + $0x8] sm:$0xff]  ;;  %v694_v3 = vld [vmem:[%s5240_s3 + $0x10] sm:$0xff] }
  0xbb   : > { %4315 = vsyncadd (%p5300_p2), [#allocation12], 4294965248  ;;  %p677_p3 = scmp.lt.s32.totalorder %s3086_s21, 15  ;;  %3345 = vmatprep.subr.mxu1 %v4350_v0  ;;  %3347 = vmatprep.mubr.msk.f32.mxu1 %vm4351_vm0, %v4350_v0  ;;  %v3595_v4 = vpack.c.bf16 %v693_v2, %v692_v1  ;;  %v695_v5 = vld [vmem:[%s5240_s3 + $0x18] sm:$0xff]  ;;  %v696_v7 = vld [vmem:[%s5240_s3 + $0x20] sm:$0xff]  ;;  %v4352_v30 = vmov 0.0|0.0  }
  0xbc   : > { %v3599_v6 = vpack.c.bf16 %v695_v5, %v694_v3  ;;  %v697_v8 = vld [vmem:[%s5240_s3 + $0x28] sm:$0xff]  ;;  %v698_v11 = vld [vmem:[%s5240_s3 + $0x30] sm:$0xff]  ;;  %v699_v12 = vld [vmem:[%s5240_s3 + $0x38] sm:$0xff]  ;;  %p668_p4 = scmp.lt.s32.totalorder %s4468_s28, 1  ;;  %s5301_s24 = sld [smem:[#allocation31_spill]]  ;;  %vm1093_vm1 = vcmask 1041409  }
  0xbd   : > { %s5319_s21 = smov (!%p677_p3, %s3086_s21), 15  ;;  %3596 = vmatprep.subr.bf16.mxu0 %v3595_v4  ;;  %v3603_v9 = vpack.c.bf16 %v697_v8, %v696_v7  ;;  %v3607_v13 = vpack.c.bf16 %v699_v12, %v698_v11  ;;  %v700_v14 = vld [vmem:[%s5240_s3 + $0x40] sm:$0xff]  ;;  %v701_v15 = vld [vmem:[%s5240_s3 + $0x48] sm:$0xff]  ;;  %v702_v17 = vld [vmem:[%s5240_s3 + $0x50] sm:$0xff]  ;;  %vm1095_vm2 = vcmask 1042434   ;;  %vm1097_vm3 = vcmask 1043459  }
  0xbe   : > { %s3087_s29 = sshll.u32 %s5319_s21, 3  ;;  %3598 = vmatpush3.bf16.msra.mxu0 %v3595_v4  ;;  %v3611_v16 = vpack.c.bf16 %v701_v15, %v700_v14  ;;  %v703_v18 = vld [vmem:[%s5240_s3 + $0x58] sm:$0xff]  ;;  %v704_v20 = vld [vmem:[%s5240_s3 + $0x60] sm:$0xff]  ;;  %v705_v21 = vld [vmem:[%s5240_s3 + $0x68] sm:$0xff]  ;;  %v4353_v4 = vmov 1966171168  }
  0xbf   : > { %s4683_s19 = scalar_lea.vmem %s5239_s2, %s3087_s29  ;;  %3600 = vmatprep.subr.bf16.mxu0 %v3599_v6  ;;  %v3615_v19 = vpack.c.bf16 %v703_v18, %v702_v17  ;;  %v3619_v22 = vpack.c.bf16 %v705_v21, %v704_v20  ;;  %v706_v23 = vld [vmem:[%s5240_s3 + $0x70] sm:$0xff]  ;;  %v707_v24 = vld [vmem:[%s5240_s3 + $0x78] sm:$0xff]  ;;  %v813_v26 = vld [vmem:[#allocation2] sm:$0xff]  ;;  %v902_v5 = vunpack.c.l.s4 %v4353_v4  ;;  %vm1099_vm4 = vcmask 1044484   ;;  %s5302_s29 = sld [smem:[#allocation30_spill]] }
  0xc0   : > { %v684_v10 = vld [vmem:[%s4683_s19] sm:$0xff]  ;;  %v3623_v25 = vpack.c.bf16 %v707_v24, %v706_v23  ;;  %v814_v27 = vld [vmem:[#allocation2 + $0x8] sm:$0xff]  ;;  %v815_v31 = vld [vmem:[#allocation2 + $0x10] sm:$0xff]  ;;  %vm1101_vm5 = vcmask 1045509   ;;  %vm1103_vm6 = vcmask 1046534   ;;  %vm1105_vm7 = vcmask 1047559  }
  0xc1   : > { %3298 = vmatprep.mubr.f32.mxu0 %v684_v10  ;;  %3346 = vmatpush3.msra.mxu1 %v684_v10  ;;  %v4718_v28 = vld [vmem:[%s4683_s19 + $0x8] sm:$0xff]  ;;  %v3628_v29 = vpack.c.bf16 %v814_v27, %v813_v26  ;;  %v816_v32 = vld [vmem:[#allocation2 + $0x18] sm:$0xff]  ;;  %v4722_v33 = vld [vmem:[%s4683_s19 + $0x10] sm:$0xff]  ;;  %v903_v7 = vunpack.c.0.s8 %v902_v5  ;;  %vm1108_vm8 = vcmask 64512   ;;  %s5303_s25 = sld [smem:[#allocation32_spill]]  ;;  %s5304_s27 = sld [smem:[#allocation23_spill]] }
  0xc2   : > { %3350 = vmatprep.subr.mxu1 %v4350_v0  ;;  %3602 = vmatpush3.bf16.msra.mxu0 %v3599_v6  ;;  %v3631_v34 = vpack.c.bf16 %v816_v32, %v815_v31  ;;  %v4727_v35 = vld [vmem:[%s4683_s19 + $0x18] sm:$0xff]  ;;  %v817_v36 = vld [vmem:[#allocation2 + $0x20] sm:$0xff]  ;;  %v818_v37 = vld [vmem:[#allocation2 + $0x28] sm:$0xff]  ;;  %v904_v6 = vlaneseq  ;;  %s5305_s23 = sld [smem:[#allocation28_spill]]  ;;  %s3103_s18 = sshll.u32 %s4468_s28, 7 }
  0xc3   : > { %3604 = vmatprep.subr.bf16.mxu0 %v3603_v9  ;;  %v4731_v38 = vld [vmem:[%s4683_s19 + $0x20] sm:$0xff]  ;;  %v3634_v39 = vpack.c.bf16 %v818_v37, %v817_v36  ;;  %v4736_v40 = vld [vmem:[%s4683_s19 + $0x28] sm:$0xff]  ;;  %v819_v41 = vld [vmem:[#allocation2 + $0x30] sm:$0xff]  ;;  %s5306_s16 = sld [smem:[#allocation35_spill]] }
  0xc4   : > { %v820_v42 = vld [vmem:[#allocation2 + $0x38] sm:$0xff]  ;;  %v4740_v43 = vld [vmem:[%s4683_s19 + $0x30] sm:$0xff]  ;;  %v821_v46 = vld [vmem:[#allocation2 + $0x40] sm:$0xff]  ;;  %v4772_v8 = vshrl.u32 %v904_v6, 7 }
  0xc5   : > { %v3637_v44 = vpack.c.bf16 %v820_v42, %v819_v41  ;;  %v4745_v45 = vld [vmem:[%s4683_s19 + $0x38] sm:$0xff]  ;;  %v822_v47 = vld [vmem:[#allocation2 + $0x48] sm:$0xff]  ;;  %v823_v49 = vld [vmem:[#allocation2 + $0x50] sm:$0xff]  ;;  %s4755_s19 = scalar_select %p668_p4, %s4468_s28, 1 }
  0xc6   : > { %3606 = vmatpush3.bf16.msra.mxu0 %v3603_v9  ;;  %v3640_v48 = vpack.c.bf16 %v822_v47, %v821_v46  ;;  %v824_v50 = vld [vmem:[#allocation2 + $0x58] sm:$0xff]  ;;  %v825_v52 = vld [vmem:[#allocation2 + $0x60] sm:$0xff]  ;;  %v826_v53 = vld [vmem:[#allocation2 + $0x68] sm:$0xff]  ;;  %v906_v9 = vsub.s32 %v903_v7, %v4772_v8  ;;  %v4776_v14 = vsub.s32 0, %v4772_v8 }
  0xc7   : > { %3608 = vmatprep.subr.bf16.mxu0 %v3607_v13  ;;  %v3643_v51 = vpack.c.bf16 %v824_v50, %v823_v49  ;;  %v3646_v54 = vpack.c.bf16 %v826_v53, %v825_v52  ;;  %v827_v55 = vld [vmem:[#allocation2 + $0x70] sm:$0xff]  ;;  %v828_v56 = vld [vmem:[#allocation2 + $0x78] sm:$0xff]  ;;  %s3084_s17 = sshll.u32 %s4755_s19, 3  ;;  %v3088_v27 = vld [vmem:[%s5242_s5] ss:$0 sm:$0xff]  ;;  %s5152_s30 = sand.u32 1, %s5304_s27  }
  0xc8   : > { %v3649_v57 = vpack.c.bf16 %v828_v56, %v827_v55  ;;  %s4765_s15 = scalar_lea.vmem %s5301_s24, %s3084_s17  ;;  %s671_s1 = scalar_lea.vmem %s5302_s29, %s3084_s17 }
  0xc9   : > { %v683_v58 = vld [vmem:[%s4765_s15] sm:$0xff]  ;;  %s3082_s26 = sshll.u32 %s5152_s30, 3  ;;  %s5164_s21 = scalar_lea.hbm %s5306_s16, %s3103_s18 }
  0xca   : > { %3610 = vmatpush3.bf16.msra.mxu0 %v3607_v13  ;;  %s667_s9 = scalar_lea.vmem [#allocation14], %s3082_s26  ;;  %s2865_s29 = scalar_lea.sflag [#allocation15], %s5152_s30 }
  0xcb   : > { %3612 = vmatprep.subr.bf16.mxu0 %v3611_v16  ;;  %s2891_s22 = sshll.u32 %s667_s9, 4  ;;  %p5307_p8 = scmp.ne.s32.totalorder %s5305_s23, 0  ;;  %s2892_s22 = int_to_ptr.vmem [resolvable:$true] %s2891_s22 }
  0xcc   : > { %s4355_s19 = smov [#allocation14]  }
  0xcd   : > { %s4232_s17 = sshll.u32 %s4355_s19, 4  ;;  %s4233_s17 = int_to_ptr.vmem [resolvable:$false] %s4232_s17 }
  0xce   : > { %3614 = vmatpush3.bf16.msra.mxu0 %v3611_v16  ;;  %p4235_p0 = scmp.lt.s32.totalorder %s2892_s22, %s4233_s17 }
  0xcf   : > { %3616 = vmatprep.subr.bf16.mxu0 %v3615_v19 }
  0xd2   : > { %3618 = vmatpush3.bf16.msra.mxu0 %v3615_v19 }
  0xd3   : > { %3620 = vmatprep.subr.bf16.mxu0 %v3619_v22 }
  0xd6   : > { %3622 = vmatpush3.bf16.msra.mxu0 %v3619_v22 }
  0xd7   : > { %3624 = vmatprep.subr.bf16.mxu0 %v3623_v25 }
  0xda   : > { %3626 = vmatpush3.bf16.msra.mxu0 %v3623_v25 }
  0xdb   : > { %3627 = vmatprep.subr.bf16.mxu0 %v4352_v30 }
  0xdd   : > { %3299 = vmatmul.mubr.f32.vlgmr.msra.gmra.mrb[0].mxu0 %v4718_v28 }
  0xde   : > { %3629 = vmatpush3.bf16.msra.mxu0 %v3628_v29  ;;  %3301 = vmatprep.mubr.f32.mxu0 %v4722_v33 }
  0xdf   : > { %3630 = vmatprep.subr.bf16.mxu0 %v4352_v30 }
  0xe1   : > { %3302 = vmatmul.mubr.f32.gmra.mrb[2].mxu0 %v4727_v35 }
  0xe2   : > { %3632 = vmatpush3.bf16.msra.mxu0 %v3631_v34  ;;  %3304 = vmatprep.mubr.f32.mxu0 %v4731_v38 }
  0xe3   : > { %3633 = vmatprep.subr.bf16.mxu0 %v4352_v30 }
  0xe5   : > { %3305 = vmatmul.mubr.f32.gmra.mrb[4].mxu0 %v4736_v40 }
  0xe6   : > { %3635 = vmatpush3.bf16.msra.mxu0 %v3634_v39  ;;  %3307 = vmatprep.mubr.f32.mxu0 %v4740_v43 }
  0xe7   : > { %3636 = vmatprep.subr.bf16.mxu0 %v4352_v30 }
  0xe9   : > { %3308 = vmatmul.mubr.f32.gmra.mrb[6].mxu0 %v4745_v45 }
  0xea   : > { %3638 = vmatpush3.bf16.msra.mxu0 %v3637_v44  ;;  %3342 = vmatprep.mubr.msk.f32.mxu0 %vm4351_vm0, %v4350_v0 }
  0xeb   : > { %3639 = vmatprep.subr.bf16.mxu0 %v4352_v30 }
  0xee   : > { %3641 = vmatpush3.bf16.msra.mxu0 %v3640_v48 }
  0xef   : > { %3642 = vmatprep.subr.bf16.mxu0 %v4352_v30 }
  0xf2   : > { %3644 = vmatpush3.bf16.msra.mxu0 %v3643_v51 }
  0xf3   : > { %3645 = vmatprep.subr.bf16.mxu0 %v4352_v30 }
  0xf6   : > { %3647 = vmatpush3.bf16.msra.mxu0 %v3646_v54 }
  0xf7   : > { %3648 = vmatprep.subr.bf16.mxu0 %v4352_v30 }
  0xfa   : > { %3650 = vmatpush3.bf16.msra.mxu0 %v3649_v57 }
  0xfb   : > { %3683 = vmatprep.subr.bf16.mxu0 %v4352_v30 }
  0xfd   : > { %3343 = vmatmul.mubr.f32.vlgmr.msra.gmra.mrb[8].mxu0 %v683_v58  ;;  %v3089_v58 = vld [vmem:[%s5243_s6] ss:$0 sm:$0xff] }
  0xfe   : > { %3417 = vmatprep.mubr.msk.f32.mxu0 %vm4351_vm0, %v4350_v0 }
 0x1b0   : > { %v3300_v59 = vpop.f32.mrb[0].mxu0 }
 0x1b1   : > { %v774_v60 = vpop.f32.mrb[1].mxu0 }
 0x1b4   : > { %v3303_v61 = vpop.f32.mrb[2].mxu0 }
 0x1b5   : > { %v784_v62 = vpop.f32.mrb[3].mxu0 }
 0x1b8   : > { %v3306_v63 = vpop.f32.mrb[4].mxu0 }
 0x1b9   : > { %v794_v1 = vpop.f32.mrb[5].mxu0 }
 0x1bc   : > { %v3309_v2 = vpop.f32.mrb[6].mxu0 }
 0x1bd   : > { %v804_v3 = vpop.f32.mrb[7].mxu0 }
 0x1d0   : > { %v895_v10 = vpop.f32.mrb[8].mxu0 }
 0x1d1   : > { %v900_v11 = vcombine.high %v895_v10, %v895_v10  ;;  %v907_v12 = vrot.slane %v895_v10, %v906_v9  ;;  %v3344_v13 = vpop.f32.mrb[9].mxu0 }
 0x1d3   : > { %v914_v15 = vrot.slane %v900_v11, %v906_v9  ;;  %v915_v16 = vcombine.high %v907_v12, %v907_v12  ;;  %v923_v17 = vrot.slane %v907_v12, %v906_v9 }
 0x1d5   : > { %v916_v18 = vcombine.high %v914_v15, %v914_v15  ;;  %v930_v19 = vrot.slane %v914_v15, %v906_v9  ;;  %v937_v20 = vrot.slane %v915_v16, %v906_v9  ;;  %v945_v21 = vcombine.high %v923_v17, %v923_v17 }
 0x1d6   : > { %v952_v22 = vrot.slane %v923_v17, %v4776_v14  ;;  %v1060_v16 = vand.u32 127, %v904_v6 }
 0x1d7   : > { %v944_v23 = vrot.slane %v916_v18, %v906_v9  ;;  %v946_v24 = vcombine.high %v930_v19, %v930_v19  ;;  %v947_v25 = vcombine.high %v937_v20, %v937_v20  ;;  %v956_v26 = vrot.slane %v937_v20, %v4776_v14 }
 0x1d8   : > { %v960_v29 = vrot.slane %v945_v21, %v4776_v14  ;;  %v968_v31 = vrot.slane %v930_v19, %v4776_v14  ;;  %v989_v32 = vadd.f32 %v952_v22, %v774_v60  ;;  %v4794_v18 = vsub.s32 %v1060_v16, %v4772_v8 }
 0x1d9   : > { %v948_v34 = vcombine.high %v944_v23, %v944_v23  ;;  %v964_v36 = vrot.slane %v947_v25, %v4776_v14  ;;  %v972_v37 = vrot.slane %v944_v23, %v4776_v14  ;;  %v976_v39 = vrot.slane %v946_v24, %v4776_v14 }
 0x1da   : > { %v990_v41 = vadd.f32 %v3300_v59, %v956_v26  ;;  %v991_v42 = vadd.f32 %v960_v29, %v784_v62  ;;  %v993_v44 = vadd.f32 %v968_v31, %v794_v1  ;;  %v1004_v46 = vadd.f32 %v3088_v27, %v989_v32 }
 0x1db   : > { %v980_v47 = vrot.slane %v948_v34, %v4776_v14  ;;  %v992_v48 = vadd.f32 %v3303_v61, %v964_v36  ;;  %v994_v49 = vadd.f32 %v3306_v63, %v972_v37  ;;  %v995_v50 = vadd.f32 %v976_v39, %v804_v3 }
 0x1dc   : > { %v1005_v51 = vadd.f32 %v3088_v27, %v990_v41  ;;  %4015 = vtanh.f32 %v1004_v46  ;;  %v1006_v52 = vadd.f32 %v3088_v27, %v991_v42  ;;  %v1008_v54 = vadd.f32 %v3088_v27, %v993_v44 }
 0x1dd   : > { %v996_v53 = vadd.f32 %v3309_v2, %v980_v47  ;;  %v1007_v55 = vadd.f32 %v3088_v27, %v992_v48  ;;  %v1009_v56 = vadd.f32 %v3088_v27, %v994_v49  ;;  %v1010_v57 = vadd.f32 %v3088_v27, %v995_v50 }
 0x1de   : > { %4017 = vtanh.f32 %v1005_v51  ;;  %v4354_v49 = vmov 0   ;;  %v4813_v50 = vsub.s32 1, %v4772_v8  ;;  %v4816_v51 = vsub.s32 2, %v4772_v8 }
 0x1df   : > { %4019 = vtanh.f32 %v1006_v52  ;;  %v1011_v60 = vadd.f32 %v3088_v27, %v996_v53  ;;  %4014 = vset.pattern.permute.xlu0 %v4354_v49  ;;  %4013 = vset.pattern.permute.xlu1 %v4354_v49  ;;  %v1127_v52 = vsub.s32 3, %v4772_v8 }
 0x1e0   : > { %4021 = vtanh.f32 %v1008_v54 }
 0x1e1   : > { %4023 = vtanh.f32 %v1007_v55 }
 0x1e2   : > { %4025 = vtanh.f32 %v1009_v56 }
 0x1e3   : > { %4027 = vtanh.f32 %v1010_v57  ;;  %v1131_v57 = vsub.s32 4, %v4772_v8 }
 0x1e4   : > { %4029 = vtanh.f32 %v1011_v60 }
 0x1e6   : > { %v4016_v59 = vpop.eup %4015 }
 0x1e7   : > { %v1027_v61 = vmul.f32 %v4016_v59, %v3089_v58 }
 0x1e8   : > { %v4018_v62 = vpop.eup %4017 }
 0x1e9   : > { %1035 = vadd.xlane.f32.xlu0 %v1027_v61  ;;  %v4020_v63 = vpop.eup %4019  ;;  %v1028_v3 = vmul.f32 %v4018_v62, %v3089_v58 }
 0x1ea   : > { %v4022_v1 = vpop.eup %4021  ;;  %v1029_v2 = vmul.f32 %v4020_v63, %v3089_v58 }
 0x1eb   : > { %v4024_v4 = vpop.eup %4023  ;;  %v1031_v9 = vmul.f32 %v4022_v1, %v3089_v58  ;;  %v1135_v1 = vsub.s32 5, %v4772_v8 }
 0x1ec   : > { %1039 = vadd.xlane.f32.xlu1 %v1029_v2  ;;  %v4026_v5 = vpop.eup %4025  ;;  %v1030_v7 = vmul.f32 %v4024_v4, %v3089_v58 }
 0x1ed   : > { %1037 = vadd.xlane.f32.xlu0 %v1028_v3  ;;  %v4028_v10 = vpop.eup %4027  ;;  %v1032_v11 = vmul.f32 %v4026_v5, %v3089_v58  ;;  %v1139_v5 = vsub.s32 6, %v4772_v8 }
 0x1ee   : > { %v1033_v12 = vmul.f32 %v4028_v10, %v3089_v58  ;;  %v4030_v13 = vpop.eup %4029 }
 0x1ef   : > { %v1034_v15 = vmul.f32 %v4030_v13, %v3089_v58 }
 0x1f0   : > { %1041 = vadd.xlane.f32.xlu1 %v1030_v7 }
 0x1f1   : > { %1043 = vadd.xlane.f32.xlu0 %v1031_v9 }
 0x1f4   : > { %1045 = vadd.xlane.f32.xlu1 %v1032_v11  ;;  %v1143_v11 = vsub.s32 7, %v4772_v8 }
 0x1f5   : > { %1047 = vadd.xlane.f32.xlu0 %v1033_v12 }
 0x1f8   : > { %1049 = vadd.xlane.f32.xlu1 %v1034_v15 }
 0x276   : > { %v1036_v17 = vpop.xlane.xlu0 %1035 }
 0x277   : > { %v1064_v21 = vrot.slane %v1036_v17, %v4794_v18 }
 0x279   : > { %v1040_v19 = vpop.xlane.xlu1 %1039 }
 0x27a   : > { %v1038_v20 = vpop.xlane.xlu0 %1037  ;;  %v1072_v23 = vrot.slane %v1040_v19, %v4794_v18 }
 0x27b   : > { %v1068_v22 = vrot.slane %v1038_v20, %v4794_v18 }
 0x27d   : > { %v1094_v24 = vsel %vm1093_vm1, %v1068_v22, %v1064_v21  ;;  %v1042_v6 = vpop.xlane.xlu1 %1041 }
 0x27e   : > { %v1096_v25 = vsel %vm1095_vm2, %v1072_v23, %v1094_v24  ;;  %v1044_v26 = vpop.xlane.xlu0 %1043  ;;  %v1076_v27 = vrot.slane %v1042_v6, %v4794_v18 }
 0x27f   : > { %v1080_v29 = vrot.slane %v1044_v26, %v4794_v18 }
 0x280   : > { %v1098_v31 = vsel %vm1097_vm3, %v1076_v27, %v1096_v25 }
 0x281   : > { %v1100_v32 = vsel %vm1099_vm4, %v1080_v29, %v1098_v31  ;;  %v1046_v34 = vpop.xlane.xlu1 %1045 }
 0x282   : > { %v1048_v36 = vpop.xlane.xlu0 %1047  ;;  %v1084_v37 = vrot.slane %v1046_v34, %v4794_v18 }
 0x283   : > { %v1088_v39 = vrot.slane %v1048_v36, %v4794_v18 }
 0x284   : > { %v1102_v41 = vsel %vm1101_vm5, %v1084_v37, %v1100_v32 }
 0x285   : > { %v1050_v42 = vpop.xlane.xlu1 %1049  ;;  %v1104_v44 = vsel %vm1103_vm6, %v1088_v39, %v1102_v41 }
 0x286   : > { %v1092_v46 = vrot.slane %v1050_v42, %v4794_v18 }
 0x288   : > { %v1106_v47 = vsel %vm1105_vm7, %v1092_v46, %v1104_v44 }
 0x289   : > { %v1109_v48 = vsel %vm1108_vm8, %v1106_v47, -inf }
 0x28a   : > { %1110 = vmax.xlane.f32.xlu0 %v1109_v48 }
 0x317   : > { %v1111_v53 = vpop.xlane.xlu0 %1110 }
 0x318   : > { %v1116_v54 = vrot.slane %v1111_v53, %v4776_v14  ;;  %v1120_v55 = vrot.slane %v1111_v53, %v4813_v50  ;;  %v1124_v56 = vrot.slane %v1111_v53, %v4816_v51  ;;  %v1128_v58 = vrot.slane %v1111_v53, %v1127_v52 }
 0x319   : > { %v1132_v2 = vrot.slane %v1111_v53, %v1131_v57  ;;  %v1136_v7 = vrot.slane %v1111_v53, %v1135_v1  ;;  %v1140_v12 = vrot.slane %v1111_v53, %v1139_v5 }
 0x31a   : > { %v1153_v59 = vsub.f32 %v1036_v17, %v1116_v54  ;;  %v1154_v60 = vsub.f32 %v1038_v20, %v1120_v55  ;;  %v1155_v61 = vsub.f32 %v1040_v19, %v1124_v56  ;;  %v1156_v3 = vsub.f32 %v1042_v6, %v1128_v58 }
 0x31b   : > { %v1157_v9 = vsub.f32 %v1044_v26, %v1132_v2  ;;  %v1158_v13 = vsub.f32 %v1046_v34, %v1136_v7  ;;  %v1144_v19 = vrot.slane %v1111_v53, %v1143_v11  ;;  %v1159_v20 = vsub.f32 %v1048_v36, %v1140_v12 }
 0x31c   : > { %v1161_v62 = vmul.f32 1.442695, %v1153_v59  ;;  %v1163_v63 = vmul.f32 1.442695, %v1154_v60  ;;  %v1165_v4 = vmul.f32 1.442695, %v1155_v61 }
 0x31d   : > { %v1167_v10 = vmul.f32 1.442695, %v1156_v3  ;;  %v1169_v15 = vmul.f32 1.442695, %v1157_v9  ;;  %v1171_v21 = vmul.f32 1.442695, %v1158_v13  ;;  %v1160_v23 = vsub.f32 %v1050_v42, %v1144_v19 }
 0x31e   : > { %4031 = vpow2.f32 %v1161_v62  ;;  %v1173_v24 = vmul.f32 1.442695, %v1159_v20 }
 0x31f   : > { %4033 = vpow2.f32 %v1163_v63  ;;  %v1175_v6 = vmul.f32 1.442695, %v1160_v23 }
 0x320   : > { %4035 = vpow2.f32 %v1165_v4 }
 0x321   : > { %4037 = vpow2.f32 %v1167_v10 }
 0x322   : > { %4039 = vpow2.f32 %v1169_v15 }
 0x323   : > { %4041 = vpow2.f32 %v1171_v21 }
 0x324   : > { %4043 = vpow2.f32 %v1173_v24 }
 0x325   : > { %4045 = vpow2.f32 %v1175_v6 }
 0x328   : > { %v4032_v16 = vpop.eup %4031 }
 0x329   : > { %v4034_v17 = vpop.eup %4033  ;;  %1186 = vperm.xlu1 %4013, %v4032_v16  }
 0x32a   : > { %1189 = vperm.xlu0 %4014, %v4034_v17   ;;  %v4036_v22 = vpop.eup %4035 }
 0x32b   : > { %v4038_v25 = vpop.eup %4037 }
 0x32c   : > { %v4040_v26 = vpop.eup %4039 }
 0x32d   : > { %1192 = vperm.xlu1 %4013, %v4036_v22   ;;  %v4042_v27 = vpop.eup %4041 }
 0x32e   : > { %v4044_v29 = vpop.eup %4043 }
 0x32f   : > { %v4046_v31 = vpop.eup %4045 }
 0x331   : > { %1195 = vperm.xlu1 %4013, %v4038_v25  }
 0x335   : > { %1198 = vperm.xlu1 %4013, %v4040_v26  }
 0x339   : > { %1201 = vperm.xlu1 %4013, %v4042_v27  }
 0x33d   : > { %1204 = vperm.xlu1 %4013, %v4044_v29  }
 0x341   : > { %1207 = vperm.xlu1 %4013, %v4046_v31  }
 0x3a8   : > { %v1187_v32 = vpop.permute.xlu1 %1186 }
 0x3a9   : > { %v1190_v39 = vpop.permute.xlu0 %1189  ;;  %v1212_v44 = vrot.slane %v1187_v32, %v4794_v18 }
 0x3aa   : > { %v1216_v42 = vrot.slane %v1190_v39, %v4794_v18 }
 0x3ac   : > { %v1193_v34 = vpop.permute.xlu1 %1192  ;;  %v1241_v53 = vsel %vm1093_vm1, %v1216_v42, %v1212_v44  ;;  %v1992_v42 = vld [vmem:[#allocation5 + $0x10] sm:$0xff] }
 0x3ad   : > { %v1220_v46 = vrot.slane %v1193_v34, %v4794_v18 }
 0x3af   : > { %v1242_v55 = vsel %vm1095_vm2, %v1220_v46, %v1241_v53  ;;  %v1995_v46 = vld [vmem:[#allocation5 + $0x28] sm:$0xff] }
 0x3b0   : > { %v1196_v36 = vpop.permute.xlu1 %1195  ;;  %v1999_v53 = vld [vmem:[#allocation5 + $0x48] sm:$0xff] }
 0x3b1   : > { %v1224_v47 = vrot.slane %v1196_v36, %v4794_v18 }
 0x3b3   : > { %v1243_v58 = vsel %vm1097_vm3, %v1224_v47, %v1242_v55  ;;  %v1997_v47 = vld [vmem:[#allocation5 + $0x38] sm:$0xff] }
 0x3b4   : > { %v1199_v37 = vpop.permute.xlu1 %1198 }
 0x3b5   : > { %v1228_v48 = vrot.slane %v1199_v37, %v4794_v18 }
 0x3b7   : > { %v1244_v59 = vsel %vm1099_vm4, %v1228_v48, %v1243_v58  ;;  %v2000_v48 = vld [vmem:[#allocation5 + $0x50] sm:$0xff]  ;;  %v2003_v58 = vld [vmem:[#allocation5 + $0x68] sm:$0xff] }
 0x3b8   : > { %v1202_v41 = vpop.permute.xlu1 %1201 }
 0x3b9   : > { %v1232_v54 = vrot.slane %v1202_v41, %v4794_v18  ;;  %v1993_v41 = vld [vmem:[#allocation5 + $0x18] sm:$0xff] }
 0x3bb   : > { %v1245_v61 = vsel %vm1101_vm5, %v1232_v54, %v1244_v59  ;;  %v1998_v54 = vld [vmem:[#allocation5 + $0x40] sm:$0xff] }
 0x3bc   : > { %v1205_v49 = vpop.permute.xlu1 %1204  ;;  %v2006_v59 = vld [vmem:[#allocation5 + $0x80] sm:$0xff] }
 0x3bd   : > { %v1236_v56 = vrot.slane %v1205_v49, %v4794_v18  ;;  %v3684_v49 = vpack.c.bf16 %v1995_v46, %v1992_v42  ;;  %v2032_v46 = vld [vmem:[#allocation5 + $0x150] sm:$0xff] }
 0x3bf   : > { %v1246_v63 = vsel %vm1103_vm6, %v1236_v56, %v1245_v61  ;;  %3685 = vmatpush3.bf16.msra.mxu0 %v3684_v49  ;;  %v2001_v56 = vld [vmem:[#allocation5 + $0x58] sm:$0xff]  ;;  %v3659_v61 = vpack.c.bf16 %v2006_v59, %v2003_v58 }
 0x3c0   : > { %v1208_v60 = vpop.permute.xlu1 %1207  ;;  %3686 = vmatprep.subr.bf16.mxu0 %v4352_v30 }
 0x3c1   : > { %v1240_v62 = vrot.slane %v1208_v60, %v4794_v18  ;;  %v3687_v60 = vpack.c.bf16 %v2001_v56, %v1998_v54 }
 0x3c3   : > { %v1247_v2 = vsel %vm1105_vm7, %v1240_v62, %v1246_v63  ;;  %3688 = vmatpush3.bf16.msra.mxu0 %v3687_v60  ;;  %v2002_v62 = vld [vmem:[#allocation5 + $0x60] sm:$0xff]  ;;  %v2005_v63 = vld [vmem:[#allocation5 + $0x78] sm:$0xff] }
 0x3c4   : > { %v1249_v3 = vsel %vm1108_vm8, %v1247_v2, 0.0  ;;  %v2004_v2 = vld [vmem:[#allocation5 + $0x70] sm:$0xff]  ;;  %3689 = vmatprep.subr.bf16.mxu0 %v4352_v30 }
 0x3c5   : > { %1250 = vadd.xlane.f32.xlu1 %v1249_v3  ;;  %v3661_v3 = vpack.c.bf16 %v2005_v63, %v2002_v62 }
 0x452   : > { %v1251_v4 = vpop.xlane.xlu1 %1250 }
 0x453   : > { %4047 = vrcp.f32 %v1251_v4  ;;  %v2007_v4 = vld [vmem:[#allocation5 + $0x88] sm:$0xff] }
 0x45d   : > { %v4048_v7 = vpop.eup %4047 }
 0x45e   : > { %v1257_v9 = vrot.slane %v4048_v7, %v4776_v14  ;;  %v1261_v12 = vrot.slane %v4048_v7, %v4813_v50  ;;  %v1265_v15 = vrot.slane %v4048_v7, %v4816_v51  ;;  %v1269_v20 = vrot.slane %v4048_v7, %v1127_v52 }
 0x45f   : > { %v1273_v23 = vrot.slane %v4048_v7, %v1131_v57  ;;  %v1285_v52 = vrot.slane %v4048_v7, %v1143_v11 }
 0x460   : > { %v1294_v10 = vmul.f32 %v4032_v16, %v1257_v9  ;;  %v1295_v13 = vmul.f32 %v4034_v17, %v1261_v12  ;;  %v1296_v19 = vmul.f32 %v4036_v22, %v1265_v15  ;;  %v1297_v21 = vmul.f32 %v4038_v25, %v1269_v20  ;;  %v2012_v9 = vld [vmem:[#allocation5 + $0xb0] sm:$0xff]  ;;  %v2011_v15 = vld [vmem:[#allocation5 + $0xa8] sm:$0xff] }
 0x461   : > { %v1298_v24 = vmul.f32 %v4040_v26, %v1273_v23  ;;  %v1277_v16 = vrot.slane %v4048_v7, %v1135_v1  ;;  %v1281_v17 = vrot.slane %v4048_v7, %v1139_v5  ;;  %v1301_v25 = vmul.f32 %v4046_v31, %v1285_v52  ;;  %v1994_v31 = vld [vmem:[#allocation5 + $0x20] sm:$0xff]  ;;  %v2009_v7 = vld [vmem:[#allocation5 + $0x98] sm:$0xff]  ;;  %v2015_v23 = vld [vmem:[#allocation5 + $0xc8] sm:$0xff] }
 0x462   : > { %1304 = vperm.xlu0 %4014, %v1294_v10   ;;  %v3690_v10 = vpack.c.bf16 %v2007_v4, %v2004_v2  ;;  %v3663_v12 = vpack.c.bf16 %v2012_v9, %v2009_v7  ;;  %v2016_v52 = vld [vmem:[#allocation5 + $0xd0] sm:$0xff] }
 0x463   : > { %v1299_v6 = vmul.f32 %v4042_v27, %v1277_v16  ;;  %v1300_v22 = vmul.f32 %v4044_v29, %v1281_v17  ;;  %v2014_v17 = vld [vmem:[#allocation5 + $0xc0] sm:$0xff] }
 0x464   : > { %3691 = vmatpush3.bf16.msra.mxu0 %v3690_v10 }
 0x465   : > { %3692 = vmatprep.subr.bf16.mxu0 %v4352_v30 }
 0x466   : > { %1384 = vperm.xlu0 %4014, %v1295_v13   ;;  %v2008_v13 = vld [vmem:[#allocation5 + $0x90] sm:$0xff] }
 0x467   : > { %v3665_v20 = vpack.c.bf16 %v2011_v15, %v2008_v13 }
 0x46a   : > { %1464 = vperm.xlu0 %4014, %v1296_v19   ;;  %v2010_v19 = vld [vmem:[#allocation5 + $0xa0] sm:$0xff] }
 0x46e   : > { %1544 = vperm.xlu0 %4014, %v1297_v21   ;;  %v2013_v21 = vld [vmem:[#allocation5 + $0xb8] sm:$0xff] }
 0x46f   : > { %v3693_v16 = vpack.c.bf16 %v2013_v21, %v2010_v19 }
 0x471   : > { %3694 = vmatpush3.bf16.msra.mxu0 %v3693_v16 }
 0x472   : > { %1624 = vperm.xlu0 %4014, %v1298_v24   ;;  %v2018_v24 = vld [vmem:[#allocation5 + $0xe0] sm:$0xff]  ;;  %3695 = vmatprep.subr.bf16.mxu0 %v4352_v30 }
 0x476   : > { %1704 = vperm.xlu0 %4014, %v1299_v6   ;;  %v3667_v6 = vpack.c.bf16 %v2018_v24, %v2015_v23 }
 0x47a   : > { %1784 = vperm.xlu0 %4014, %v1300_v22   ;;  %v2017_v22 = vld [vmem:[#allocation5 + $0xd8] sm:$0xff] }
 0x47e   : > { %1864 = vperm.xlu0 %4014, %v1301_v25   ;;  %v3669_v25 = vpack.c.bf16 %v2017_v22, %v2014_v17 }
 0x4e1   : > { %v1305_v32 = vpop.permute.xlu0 %1304 }
 0x4e2   : > { %v1309_v57 = vrot.slane %v1305_v32, %v4794_v18  ;;  %v2019_v32 = vld [vmem:[#allocation5 + $0xe8] sm:$0xff] }
 0x4e4   : > { %3348 = vmatmul.mubr.msk.f32.vlgmr.msra.gmra.mrb[0].mxu1 %vm1108_vm8, %v1309_v57  ;;  %v2021_v57 = vld [vmem:[#allocation5 + $0xf8] sm:$0xff] }
 0x4e5   : > { %3351 = vmatpush3.msra.mxu1 %v4718_v28  ;;  %v1385_v1 = vpop.permute.xlu0 %1384  ;;  %3352 = vmatprep.mubr.msk.f32.mxu1 %vm4351_vm0, %v4350_v0 }
 0x4e6   : > { %v1389_v5 = vrot.slane %v1385_v1, %v4794_v18  ;;  %3355 = vmatprep.subr.mxu1 %v4350_v0  ;;  %v2024_v1 = vld [vmem:[#allocation5 + $0x110] sm:$0xff] }
 0x4e8   : > { %3353 = vmatmul.mubr.msk.f32.vlgmr.msra.gmra.mrb[2].mxu1 %vm1108_vm8, %v1389_v5  ;;  %v3696_v5 = vpack.c.bf16 %v2019_v32, %v2016_v52  ;;  %v1942_v52 = vld [vmem:[%s5244_s7] sm:$0xff]  ;;  %v1944_v32 = vld [vmem:[%s5244_s7 + $0x10] sm:$0xff] }
 0x4e9   : > { %3356 = vmatpush3.msra.mxu1 %v4722_v33  ;;  %v1465_v8 = vpop.permute.xlu0 %1464  ;;  %3357 = vmatprep.mubr.msk.f32.mxu1 %vm4351_vm0, %v4350_v0 }
 0x4ea   : > { %v1469_v11 = vrot.slane %v1465_v8, %v4794_v18  ;;  %3360 = vmatprep.subr.mxu1 %v4350_v0  ;;  %v3671_v8 = vpack.c.bf16 %v2024_v1, %v2021_v57  ;;  %3697 = vmatpush3.bf16.msra.mxu0 %v3696_v5  ;;  %v1947_v57 = vld [vmem:[%s5244_s7 + $0x28] sm:$0xff]  ;;  %v1949_v5 = vld [vmem:[%s5244_s7 + $0x38] sm:$0xff] }
 0x4eb   : > { %3698 = vmatprep.subr.bf16.mxu0 %v4352_v30 }
 0x4ec   : > { %3358 = vmatmul.mubr.msk.f32.vlgmr.msra.gmra.mrb[4].mxu1 %vm1108_vm8, %v1469_v11  ;;  %v2020_v11 = vld [vmem:[#allocation5 + $0xf0] sm:$0xff] }
 0x4ed   : > { %3361 = vmatpush3.msra.mxu1 %v4727_v35  ;;  %v1545_v28 = vpop.permute.xlu0 %1544  ;;  %3362 = vmatprep.mubr.msk.f32.mxu1 %vm4351_vm0, %v4350_v0 }
 0x4ee   : > { %v1549_v26 = vrot.slane %v1545_v28, %v4794_v18  ;;  %3365 = vmatprep.subr.mxu1 %v4350_v0  ;;  %v2023_v28 = vld [vmem:[#allocation5 + $0x108] sm:$0xff] }
 0x4f0   : > { %3363 = vmatmul.mubr.msk.f32.vlgmr.msra.gmra.mrb[6].mxu1 %vm1108_vm8, %v1549_v26  ;;  %v2022_v26 = vld [vmem:[#allocation5 + $0x100] sm:$0xff] }
 0x4f1   : > { %3366 = vmatpush3.msra.mxu1 %v4731_v38  ;;  %v1625_v33 = vpop.permute.xlu0 %1624  ;;  %3367 = vmatprep.mubr.msk.f32.mxu1 %vm4351_vm0, %v4350_v0  ;;  %v1991_v38 = vld [vmem:[#allocation5 + $0x8] sm:$0xff] }
 0x4f2   : > { %v1629_v27 = vrot.slane %v1625_v33, %v4794_v18  ;;  %3370 = vmatprep.subr.mxu1 %v4350_v0  ;;  %v3651_v36 = vpack.c.bf16 %v1994_v31, %v1991_v38  ;;  %v3673_v33 = vpack.c.bf16 %v2023_v28, %v2020_v11 }
 0x4f4   : > { %3368 = vmatmul.mubr.msk.f32.vlgmr.msra.gmra.mrb[8].mxu1 %vm1108_vm8, %v1629_v27  ;;  %v2025_v27 = vld [vmem:[#allocation5 + $0x118] sm:$0xff] }
 0x4f5   : > { %3371 = vmatpush3.msra.mxu1 %v4736_v40  ;;  %v1705_v35 = vpop.permute.xlu0 %1704  ;;  %3372 = vmatprep.mubr.msk.f32.mxu1 %vm4351_vm0, %v4350_v0  ;;  %v3699_v38 = vpack.c.bf16 %v2025_v27, %v2022_v26  ;;  %v3740_v27 = vpack.c.bf16 %v1947_v57, %v1944_v32  ;;  %v1980_v32 = vld [vmem:[%s5244_s7 + $0x130] sm:$0xff]  ;;  %v1983_v57 = vld [vmem:[%s5244_s7 + $0x148] sm:$0xff] }
 0x4f6   : > { %v1709_v29 = vrot.slane %v1705_v35, %v4794_v18  ;;  %3375 = vmatprep.subr.mxu1 %v4350_v0  ;;  %v2027_v35 = vld [vmem:[#allocation5 + $0x128] sm:$0xff] }
 0x4f7   : > { %3700 = vmatpush3.bf16.msra.mxu0 %v3699_v38  ;;  %v1951_v38 = vld [vmem:[%s5244_s7 + $0x48] sm:$0xff] }
 0x4f8   : > { %3373 = vmatmul.mubr.msk.f32.vlgmr.msra.gmra.mrb[10].mxu1 %vm1108_vm8, %v1709_v29  ;;  %v2030_v29 = vld [vmem:[#allocation5 + $0x140] sm:$0xff]  ;;  %3701 = vmatprep.subr.bf16.mxu0 %v4352_v30 }
 0x4f9   : > { %3376 = vmatpush3.msra.mxu1 %v4740_v43  ;;  %v1785_v34 = vpop.permute.xlu0 %1784  ;;  %3377 = vmatprep.mubr.msk.f32.mxu1 %vm4351_vm0, %v4350_v0  ;;  %v1990_v43 = vld [vmem:[#allocation5] sm:$0xff]  ;;  %v3675_v31 = vpack.c.bf16 %v2030_v29, %v2027_v35  ;;  %v1948_v35 = vld [vmem:[%s5244_s7 + $0x30] sm:$0xff] }
 0x4fa   : > { %v1789_v40 = vrot.slane %v1785_v34, %v4794_v18  ;;  %3380 = vmatprep.subr.mxu1 %v4350_v0  ;;  %v3653_v44 = vpack.c.bf16 %v1993_v41, %v1990_v43  ;;  %v2026_v34 = vld [vmem:[#allocation5 + $0x120] sm:$0xff]  ;;  %v2033_v43 = vld [vmem:[#allocation5 + $0x158] sm:$0xff]  ;;  %v2036_v41 = vld [vmem:[#allocation5 + $0x170] sm:$0xff] }
 0x4fc   : > { %3378 = vmatmul.mubr.msk.f32.vlgmr.msra.gmra.mrb[12].mxu1 %vm1108_vm8, %v1789_v40  ;;  %v2029_v40 = vld [vmem:[#allocation5 + $0x138] sm:$0xff] }
 0x4fd   : > { %3381 = vmatpush3.msra.mxu1 %v4745_v45  ;;  %v1865_v37 = vpop.permute.xlu0 %1864  ;;  %3382 = vmatprep.mubr.msk.f32.mxu1 %vm4351_vm0, %v4350_v0  ;;  %v3655_v45 = vpack.c.bf16 %v2000_v48, %v1997_v47  ;;  %v2035_v47 = vld [vmem:[#allocation5 + $0x168] sm:$0xff]  ;;  %v2034_v48 = vld [vmem:[#allocation5 + $0x160] sm:$0xff] }
 0x4fe   : > { %v1869_v39 = vrot.slane %v1865_v37, %v4794_v18  ;;  %3652 = vmatprep.subr.bf16.mxu1 %v3651_v36  ;;  %v1996_v18 = vld [vmem:[#allocation5 + $0x30] sm:$0xff]  ;;  %v3677_v37 = vpack.c.bf16 %v2029_v40, %v2026_v34  ;;  %v3681_v49 = vpack.c.bf16 %v2035_v47, %v2032_v46  ;;  %v1953_v34 = vld [vmem:[%s5244_s7 + $0x58] sm:$0xff]  ;;  %v1959_v47 = vld [vmem:[%s5244_s7 + $0x88] sm:$0xff] }
 0x4ff   : > { %v3657_v55 = vpack.c.bf16 %v1999_v53, %v1996_v18  ;;  %v2028_v36 = vld [vmem:[#allocation5 + $0x130] sm:$0xff]  ;;  %v1943_v18 = vld [vmem:[%s5244_s7 + $0x8] sm:$0xff]  ;;  %v1946_v53 = vld [vmem:[%s5244_s7 + $0x20] sm:$0xff] }
 0x500   : > { %3383 = vmatmul.mubr.msk.f32.vlgmr.msra.gmra.mrb[14].mxu1 %vm1108_vm8, %v1869_v39  ;;  %v2031_v39 = vld [vmem:[#allocation5 + $0x148] sm:$0xff]  ;;  %v1956_v46 = vld [vmem:[%s5244_s7 + $0x70] sm:$0xff] }
 0x501   : > { %2125 = vmatprep.mubr.f32.mxu1 %v4350_v0  ;;  %3654 = vmatpush1.bf16.msra.mxu1 %v3653_v44  ;;  %v3702_v42 = vpack.c.bf16 %v2031_v39, %v2028_v36  ;;  %v3679_v44 = vpack.c.bf16 %v2036_v41, %v2033_v43  ;;  %v1955_v36 = vld [vmem:[%s5244_s7 + $0x68] sm:$0xff]  ;;  %v3713_v39 = vpack.c.bf16 %v1951_v38, %v1948_v35  ;;  %v1954_v41 = vld [vmem:[%s5244_s7 + $0x60] sm:$0xff]  ;;  %v1989_v35 = vld [vmem:[%s5244_s7 + $0x178] sm:$0xff] }
 0x502   : > { %3656 = vmatprep.subr.bf16.mxu1 %v3655_v45  ;;  %v2037_v45 = vld [vmem:[#allocation5 + $0x178] sm:$0xff]  ;;  %v2367_v38 = vld [vmem:[#allocation7 + $0x20] sm:$0xff] }
 0x503   : > { %3703 = vmatpush3.bf16.msra.mxu0 %v3702_v42  ;;  %v3705_v54 = vpack.c.bf16 %v2037_v45, %v2034_v48  ;;  %v1961_v48 = vld [vmem:[%s5244_s7 + $0x98] sm:$0xff] }
 0x504   : > { %3704 = vmatprep.subr.bf16.mxu0 %v4352_v30 }
 0x505   : > { %3658 = vmatpush1.bf16.msra.mxu1 %v3657_v55  ;;  %v3707_v55 = vpack.c.bf16 %v1946_v53, %v1943_v18  ;;  %v3746_v18 = vpack.c.bf16 %v1959_v47, %v1956_v46  ;;  %v1960_v53 = vld [vmem:[%s5244_s7 + $0x90] sm:$0xff]  ;;  %v5087_v46 = vld [vmem:[%s671_s1] sm:$0xff]  ;;  %s4228_s1 = scalar_lea.vmem %s2892_s22, 128 }
 0x506   : > { %3660 = vmatprep.subr.bf16.mxu1 %v3659_v61  ;;  %p4229_p7 = scmp.ne.s32.totalorder %s2892_s22, %s4228_s1 }
 0x507   : > { %3706 = vmatpush3.bf16.msra.mxu0 %v3705_v54 }
 0x508   : > { %3739 = vmatprep.subr.bf16.mxu0 %v4352_v30  ;;  %p4230_p11 = pnand %p4229_p7, %p5307_p8 }
 0x509   : > { %3662 = vmatpush1.bf16.msra.mxu1 %v3661_v3 }
 0x50a   : > { %3664 = vmatprep.subr.bf16.mxu1 %v3663_v12  ;;  %p4231_p5 = pneg %p4230_p11 }
 0x50d   : > { %3666 = vmatpush1.bf16.msra.mxu1 %v3665_v20 }
 0x50e   : > { %3668 = vmatprep.subr.bf16.mxu1 %v3667_v6 }
 0x511   : > { %3670 = vmatpush1.bf16.msra.mxu1 %v3669_v25  ;;  %v1945_v25 = vld [vmem:[%s5244_s7 + $0x18] sm:$0xff] }
 0x512   : > { %3672 = vmatprep.subr.bf16.mxu1 %v3671_v8  ;;  %v1952_v8 = vld [vmem:[%s5244_s7 + $0x50] sm:$0xff] }
 0x513   : > { %v3711_v29 = vpack.c.bf16 %v1952_v8, %v1949_v5  ;;  %v1988_v5 = vld [vmem:[%s5244_s7 + $0x170] sm:$0xff] }
 0x515   : > { %3674 = vmatpush1.bf16.msra.mxu1 %v3673_v33  ;;  %v3709_v33 = vpack.c.bf16 %v1945_v25, %v1942_v52  ;;  %v1981_v25 = vld [vmem:[%s5244_s7 + $0x138] sm:$0xff] }
 0x516   : > { %3676 = vmatprep.subr.bf16.mxu1 %v3675_v31  ;;  %v1950_v31 = vld [vmem:[%s5244_s7 + $0x40] sm:$0xff] }
 0x517   : > { %v3743_v43 = vpack.c.bf16 %v1953_v34, %v1950_v31 }
 0x519   : > { %3678 = vmatpush1.bf16.msra.mxu1 %v3677_v37  ;;  %v1958_v37 = vld [vmem:[%s5244_s7 + $0x80] sm:$0xff] }
 0x51a   : > { %3680 = vmatprep.subr.bf16.mxu1 %v3679_v44  ;;  %v3715_v42 = vpack.c.bf16 %v1958_v37, %v1955_v36  ;;  %v1957_v44 = vld [vmem:[%s5244_s7 + $0x78] sm:$0xff]  ;;  %v2363_v36 = vld [vmem:[#allocation7] sm:$0xff] }
 0x51b   : > { %v3717_v45 = vpack.c.bf16 %v1957_v44, %v1954_v41  ;;  %v2368_v41 = vld [vmem:[#allocation7 + $0x28] sm:$0xff]  ;;  %v2373_v44 = vld [vmem:[#allocation7 + $0x50] sm:$0xff] }
 0x51d   : > { %3682 = vmatpush1.bf16.msra.mxu1 %v3681_v49  ;;  %v1964_v49 = vld [vmem:[%s5244_s7 + $0xb0] sm:$0xff] }
 0x51e   : > { %3708 = vmatprep.subr.bf16.mxu1 %v3707_v55  ;;  %v3719_v54 = vpack.c.bf16 %v1964_v49, %v1961_v48  ;;  %v1963_v55 = vld [vmem:[%s5244_s7 + $0xa8] sm:$0xff]  ;;  %v2369_v48 = vld [vmem:[#allocation7 + $0x30] sm:$0xff] }
 0x5b7   : > { %v1378_v56 = vpop.f32.mrb[0].mxu1 }
 0x5b8   : > { %v3349_v58 = vpop.f32.mrb[1].mxu1 }
 0x5b9   : > { %v1965_v58 = vld [vmem:[%s5244_s7 + $0xb8] sm:$0xff] }
 0x5bb   : > { %v1458_v59 = vpop.f32.mrb[2].mxu1 }
 0x5bc   : > { %v2046_v60 = vrot.slane %v1458_v59, 7  ;;  %v3354_v61 = vpop.f32.mrb[3].mxu1  ;;  %v1967_v59 = vld [vmem:[%s5244_s7 + $0xc8] sm:$0xff] }
 0x5bd   : > { %v3721_v61 = vpack.c.bf16 %v1963_v55, %v1960_v53  ;;  %v2371_v53 = vld [vmem:[#allocation7 + $0x40] sm:$0xff]  ;;  %v2376_v55 = vld [vmem:[#allocation7 + $0x68] sm:$0xff] }
 0x5be   : > { %v2047_v62 = vsel %vm1093_vm1, %v2046_v60, %v1378_v56  ;;  %v1962_v56 = vld [vmem:[%s5244_s7 + $0xa0] sm:$0xff] }
 0x5bf   : > { %v1538_v63 = vpop.f32.mrb[4].mxu1  ;;  %v1970_v60 = vld [vmem:[%s5244_s7 + $0xe0] sm:$0xff] }
 0x5c0   : > { %v2048_v2 = vrot.slane %v1538_v63, 6  ;;  %v3359_v3 = vpop.f32.mrb[5].mxu1  ;;  %v1966_v63 = vld [vmem:[%s5244_s7 + $0xc0] sm:$0xff] }
 0x5c1   : > { %v1969_v3 = vld [vmem:[%s5244_s7 + $0xd8] sm:$0xff] }
 0x5c2   : > { %v2049_v4 = vsel %vm1095_vm2, %v2048_v2, %v2047_v62  ;;  %v3749_v62 = vpack.c.bf16 %v1965_v58, %v1962_v56  ;;  %v3723_v2 = vpack.c.bf16 %v1970_v60, %v1967_v59  ;;  %v2379_v56 = vld [vmem:[#allocation7 + $0x80] sm:$0xff] }
 0x5c3   : > { %v1618_v7 = vpop.f32.mrb[6].mxu1  ;;  %v2375_v59 = vld [vmem:[#allocation7 + $0x60] sm:$0xff] }
 0x5c4   : > { %v2050_v9 = vrot.slane %v1618_v7, 5  ;;  %v3364_v10 = vpop.f32.mrb[7].mxu1  ;;  %v1971_v7 = vld [vmem:[%s5244_s7 + $0xe8] sm:$0xff] }
 0x5c5   : > { %v1976_v10 = vld [vmem:[%s5244_s7 + $0x110] sm:$0xff] }
 0x5c6   : > { %v2051_v12 = vsel %vm1097_vm3, %v2050_v9, %v2049_v4  ;;  %v1968_v4 = vld [vmem:[%s5244_s7 + $0xd0] sm:$0xff]  ;;  %v1973_v9 = vld [vmem:[%s5244_s7 + $0xf8] sm:$0xff] }
 0x5c7   : > { %v1698_v13 = vpop.f32.mrb[8].mxu1 }
 0x5c8   : > { %v2052_v15 = vrot.slane %v1698_v13, 4  ;;  %v3369_v19 = vpop.f32.mrb[9].mxu1  ;;  %v3752_v13 = vpack.c.bf16 %v1971_v7, %v1968_v4  ;;  %v2385_v4 = vld [vmem:[#allocation7 + $0xb0] sm:$0xff] }
 0x5c9   : > { %v3727_v19 = vpack.c.bf16 %v1976_v10, %v1973_v9  ;;  %v2381_v9 = vld [vmem:[#allocation7 + $0x90] sm:$0xff] }
 0x5ca   : > { %v2053_v20 = vsel %vm1099_vm4, %v2052_v15, %v2051_v12  ;;  %v3725_v12 = vpack.c.bf16 %v1969_v3, %v1966_v63  ;;  %v1972_v15 = vld [vmem:[%s5244_s7 + $0xf0] sm:$0xff]  ;;  %v2382_v3 = vld [vmem:[#allocation7 + $0x98] sm:$0xff] }
 0x5cb   : > { %v1778_v21 = vpop.f32.mrb[10].mxu1  ;;  %v2377_v63 = vld [vmem:[#allocation7 + $0x70] sm:$0xff] }
 0x5cc   : > { %v2054_v23 = vrot.slane %v1778_v21, 3  ;;  %v3374_v24 = vpop.f32.mrb[11].mxu1  ;;  %v1974_v21 = vld [vmem:[%s5244_s7 + $0x100] sm:$0xff] }
 0x5cd   : > { %v1979_v24 = vld [vmem:[%s5244_s7 + $0x128] sm:$0xff] }
 0x5ce   : > { %v2055_v16 = vsel %vm1101_vm5, %v2054_v23, %v2053_v20  ;;  %v1975_v20 = vld [vmem:[%s5244_s7 + $0x108] sm:$0xff]  ;;  %v1977_v23 = vld [vmem:[%s5244_s7 + $0x118] sm:$0xff] }
 0x5cf   : > { %v1858_v6 = vpop.f32.mrb[12].mxu1 }
 0x5d0   : > { %v2056_v17 = vrot.slane %v1858_v6, 2  ;;  %v3379_v22 = vpop.f32.mrb[13].mxu1  ;;  %v3729_v6 = vpack.c.bf16 %v1975_v20, %v1972_v15  ;;  %v2383_v15 = vld [vmem:[#allocation7 + $0xa0] sm:$0xff]  ;;  %v2388_v20 = vld [vmem:[#allocation7 + $0xc8] sm:$0xff] }
 0x5d1   : > { %v1978_v22 = vld [vmem:[%s5244_s7 + $0x120] sm:$0xff] }
 0x5d2   : > { %v2057_v1 = vsel %vm1103_vm6, %v2056_v17, %v2055_v16  ;;  %v1982_v16 = vld [vmem:[%s5244_s7 + $0x140] sm:$0xff]  ;;  %v3755_v17 = vpack.c.bf16 %v1977_v23, %v1974_v21  ;;  %v3733_v8 = vpack.c.bf16 %v1981_v25, %v1978_v22  ;;  %v2389_v22 = vld [vmem:[#allocation7 + $0xd0] sm:$0xff]  ;;  %v2394_v25 = vld [vmem:[#allocation7 + $0xf8] sm:$0xff] }
 0x5d3   : > { %v1938_v11 = vpop.f32.mrb[14].mxu1  ;;  %v3731_v52 = vpack.c.bf16 %v1982_v16, %v1979_v24  ;;  %v2391_v21 = vld [vmem:[#allocation7 + $0xe0] sm:$0xff] }
 0x5d4   : > { %v2058_v28 = vrot.slane %v1938_v11, 1  ;;  %v3384_v26 = vpop.f32.mrb[15].mxu1  ;;  %v3758_v11 = vpack.c.bf16 %v1983_v57, %v1980_v32  ;;  %v2387_v24 = vld [vmem:[#allocation7 + $0xc0] sm:$0xff]  ;;  %v2397_v32 = vld [vmem:[#allocation7 + $0x110] sm:$0xff] }
 0x5d6   : > { %v4960_v40 = vsel %vm1105_vm7, %v2058_v28, %v2057_v1  ;;  %v1985_v1 = vld [vmem:[%s5244_s7 + $0x158] sm:$0xff]  ;;  %v1984_v28 = vld [vmem:[%s5244_s7 + $0x150] sm:$0xff] }
 0x5d7   : > { %2126 = vmatmul.mubr.f32.vlgmr.msra.gmra.mrb[16].mxu1 %v4960_v40  ;;  %3418 = vmatmul.mubr.f32.vlgmr.msra.gmra.mrb[10].mxu0 %v4960_v40  ;;  %v3735_v26 = vpack.c.bf16 %v1988_v5, %v1985_v1  ;;  %v2393_v1 = vld [vmem:[#allocation7 + $0xf0] sm:$0xff] }
 0x5d8   : > { %3710 = vmatpush1.bf16.msra.mxu1 %v3709_v33  ;;  %3741 = vmatpush3.bf16.msra.mxu0 %v3740_v27  ;;  %v1987_v33 = vld [vmem:[%s5244_s7 + $0x168] sm:$0xff]  ;;  %v1986_v27 = vld [vmem:[%s5244_s7 + $0x160] sm:$0xff] }
 0x5d9   : > { %3712 = vmatprep.subr.bf16.mxu1 %v3711_v29  ;;  %3742 = vmatprep.subr.bf16.mxu0 %v4352_v30  ;;  %v2364_v29 = vld [vmem:[#allocation7 + $0x8] sm:$0xff]  ;;  %v3737_v31 = vpack.c.bf16 %v1987_v33, %v1984_v28  ;;  %v3761_v34 = vpack.c.bf16 %v1989_v35, %v1986_v27  ;;  %v2395_v28 = vld [vmem:[#allocation7 + $0x100] sm:$0xff] }
 0x5da   : > { %3452 = vmatprep.mubr.msk.f32.mxu0 %vm4351_vm0, %v4350_v0  ;;  %2266 = vmatprep.mubr.f32.mxu1 %v4350_v0  ;;  %v3763_v37 = vpack.c.bf16 %v2367_v38, %v2364_v29  ;;  %v2400_v33 = vld [vmem:[#allocation7 + $0x128] sm:$0xff]  ;;  %v2403_v27 = vld [vmem:[#allocation7 + $0x140] sm:$0xff] }
 0x5db   : > { %v2399_v29 = vld [vmem:[#allocation7 + $0x120] sm:$0xff] }
 0x5dc   : > { %3714 = vmatpush1.bf16.msra.mxu1 %v3713_v39  ;;  %3744 = vmatpush3.bf16.msra.mxu0 %v3743_v43  ;;  %v2366_v39 = vld [vmem:[#allocation7 + $0x18] sm:$0xff]  ;;  %v2365_v43 = vld [vmem:[#allocation7 + $0x10] sm:$0xff] }
 0x5dd   : > { %3716 = vmatprep.subr.bf16.mxu1 %v3715_v42  ;;  %3745 = vmatprep.subr.bf16.mxu0 %v4352_v30  ;;  %v2370_v42 = vld [vmem:[#allocation7 + $0x38] sm:$0xff]  ;;  %v3765_v47 = vpack.c.bf16 %v2366_v39, %v2363_v36  ;;  %v3796_v49 = vpack.c.bf16 %v2368_v41, %v2365_v43  ;;  %v2401_v36 = vld [vmem:[#allocation7 + $0x130] sm:$0xff] }
 0x5de   : > { %v2406_v39 = vld [vmem:[#allocation7 + $0x158] sm:$0xff]  ;;  %v2409_v43 = vld [vmem:[#allocation7 + $0x170] sm:$0xff] }
 0x5e0   : > { %3718 = vmatpush1.bf16.msra.mxu1 %v3717_v45  ;;  %3747 = vmatpush3.bf16.msra.mxu0 %v3746_v18  ;;  %v3767_v45 = vpack.c.bf16 %v2373_v44, %v2370_v42  ;;  %v2372_v18 = vld [vmem:[#allocation7 + $0x48] sm:$0xff]  ;;  %v2405_v42 = vld [vmem:[#allocation7 + $0x150] sm:$0xff] }
 0x5e1   : > { %3720 = vmatprep.subr.bf16.mxu1 %v3719_v54  ;;  %3748 = vmatprep.subr.bf16.mxu0 %v4352_v30  ;;  %v2374_v54 = vld [vmem:[#allocation7 + $0x58] sm:$0xff]  ;;  %v3769_v58 = vpack.c.bf16 %v2372_v18, %v2369_v48  ;;  %v2408_v48 = vld [vmem:[#allocation7 + $0x168] sm:$0xff] }
 0x5e2   : > { %v3799_v60 = vpack.c.bf16 %v2374_v54, %v2371_v53  ;;  %v3793_v18 = vpack.c.bf16 %v2408_v48, %v2405_v42  ;;  %v2606_v54 = vld [vmem:[#allocation10] sm:$0xff] }
 0x5e3   : > { %v2770_v42 = vld [vmem:[#allocation11 + $0x40] sm:$0xff] }
 0x5e4   : > { %3722 = vmatpush1.bf16.msra.mxu1 %v3721_v61  ;;  %3750 = vmatpush3.bf16.msra.mxu0 %v3749_v62  ;;  %v3771_v61 = vpack.c.bf16 %v2379_v56, %v2376_v55  ;;  %v2378_v62 = vld [vmem:[#allocation7 + $0x78] sm:$0xff]  ;;  %v2607_v55 = vld [vmem:[#allocation10 + $0x8] sm:$0xff] }
 0x5e5   : > { %3724 = vmatprep.subr.bf16.mxu1 %v3723_v2  ;;  %3751 = vmatprep.subr.bf16.mxu0 %v4352_v30  ;;  %v2380_v2 = vld [vmem:[#allocation7 + $0x88] sm:$0xff]  ;;  %v3773_v7 = vpack.c.bf16 %v2378_v62, %v2375_v59  ;;  %v3820_v56 = vpack.c.bf16 %v2607_v55, %v2606_v54  ;;  %v2609_v59 = vld [vmem:[#allocation10 + $0x18] sm:$0xff]  ;;  %v2610_v62 = vld [vmem:[#allocation10 + $0x20] sm:$0xff] }
 0x5e6   : > { %v3802_v10 = vpack.c.bf16 %v2380_v2, %v2377_v63  ;;  %v2611_v63 = vld [vmem:[#allocation10 + $0x28] sm:$0xff] }
 0x5e7   : > { %v3826_v2 = vpack.c.bf16 %v2611_v63, %v2610_v62 }
 0x5e8   : > { %3726 = vmatpush1.bf16.msra.mxu1 %v3725_v12  ;;  %3753 = vmatpush3.bf16.msra.mxu0 %v3752_v13  ;;  %v3775_v12 = vpack.c.bf16 %v2385_v4, %v2382_v3  ;;  %v2384_v13 = vld [vmem:[#allocation7 + $0xa8] sm:$0xff]  ;;  %v2612_v3 = vld [vmem:[#allocation10 + $0x30] sm:$0xff]  ;;  %v2613_v4 = vld [vmem:[#allocation10 + $0x38] sm:$0xff] }
 0x5e9   : > { %3728 = vmatprep.subr.bf16.mxu1 %v3727_v19  ;;  %3754 = vmatprep.subr.bf16.mxu0 %v4352_v30  ;;  %v2386_v19 = vld [vmem:[#allocation7 + $0xb8] sm:$0xff]  ;;  %v3777_v23 = vpack.c.bf16 %v2384_v13, %v2381_v9  ;;  %v2614_v9 = vld [vmem:[#allocation10 + $0x40] sm:$0xff]  ;;  %v2616_v13 = vld [vmem:[#allocation10 + $0x50] sm:$0xff] }
 0x5ea   : > { %v3805_v16 = vpack.c.bf16 %v2386_v19, %v2383_v15  ;;  %v2617_v15 = vld [vmem:[#allocation10 + $0x58] sm:$0xff] }
 0x5eb   : > { %v3835_v19 = vpack.c.bf16 %v2617_v15, %v2616_v13 }
 0x5ec   : > { %3730 = vmatpush1.bf16.msra.mxu1 %v3729_v6  ;;  %3756 = vmatpush3.bf16.msra.mxu0 %v3755_v17  ;;  %v3779_v6 = vpack.c.bf16 %v2391_v21, %v2388_v20  ;;  %v2390_v17 = vld [vmem:[#allocation7 + $0xd8] sm:$0xff]  ;;  %v2618_v20 = vld [vmem:[#allocation10 + $0x60] sm:$0xff]  ;;  %v2619_v21 = vld [vmem:[#allocation10 + $0x68] sm:$0xff] }
 0x5ed   : > { %3732 = vmatprep.subr.bf16.mxu1 %v3731_v52  ;;  %3757 = vmatprep.subr.bf16.mxu0 %v4352_v30  ;;  %v2392_v52 = vld [vmem:[#allocation7 + $0xe8] sm:$0xff]  ;;  %v3781_v57 = vpack.c.bf16 %v2390_v17, %v2387_v24  ;;  %v2620_v24 = vld [vmem:[#allocation10 + $0x70] sm:$0xff]  ;;  %v2590_v17 = vld [vmem:[#allocation8] sm:$0xff] }
 0x5ee   : > { %v3808_v5 = vpack.c.bf16 %v2392_v52, %v2389_v22  ;;  %v2591_v22 = vld [vmem:[#allocation8 + $0x8] sm:$0xff]  ;;  %v2762_v52 = vld [vmem:[#allocation11] sm:$0xff] }
 0x5f0   : > { %3734 = vmatpush1.bf16.msra.mxu1 %v3733_v8  ;;  %3759 = vmatpush3.bf16.msra.mxu0 %v3758_v11  ;;  %v3783_v8 = vpack.c.bf16 %v2397_v32, %v2394_v25  ;;  %v2396_v11 = vld [vmem:[#allocation7 + $0x108] sm:$0xff]  ;;  %v3844_v25 = vpack.c.bf16 %v2591_v22, %v2590_v17 }
 0x5f1   : > { %3736 = vmatprep.subr.bf16.mxu1 %v3735_v26  ;;  %3760 = vmatprep.subr.bf16.mxu0 %v4352_v30  ;;  %v2398_v26 = vld [vmem:[#allocation7 + $0x118] sm:$0xff]  ;;  %v3785_v35 = vpack.c.bf16 %v2396_v11, %v2393_v1  ;;  %v2763_v32 = vld [vmem:[#allocation11 + $0x8] sm:$0xff] }
 0x5f2   : > { %v3811_v38 = vpack.c.bf16 %v2398_v26, %v2395_v28  ;;  %v2593_v1 = vld [vmem:[#allocation8 + $0x18] sm:$0xff] }
 0x5f3   : > { %v2765_v11 = vld [vmem:[#allocation11 + $0x18] sm:$0xff] }
 0x5f4   : > { %3738 = vmatpush1.bf16.msra.mxu1 %v3737_v31  ;;  %3762 = vmatpush3.bf16.msra.mxu0 %v3761_v34  ;;  %v3787_v31 = vpack.c.bf16 %v2403_v27, %v2400_v33  ;;  %v2402_v34 = vld [vmem:[#allocation7 + $0x138] sm:$0xff]  ;;  %v2766_v27 = vld [vmem:[#allocation11 + $0x20] sm:$0xff] }
 0x5f5   : > { %3764 = vmatprep.subr.bf16.mxu1 %v3763_v37  ;;  %3795 = vmatprep.subr.bf16.mxu0 %v4352_v30  ;;  %v2404_v37 = vld [vmem:[#allocation7 + $0x148] sm:$0xff]  ;;  %v3789_v41 = vpack.c.bf16 %v2402_v34, %v2399_v29 }
 0x5f6   : > { %v3814_v44 = vpack.c.bf16 %v2404_v37, %v2401_v36  ;;  %v2768_v36 = vld [vmem:[#allocation11 + $0x30] sm:$0xff]  ;;  %v2769_v37 = vld [vmem:[#allocation11 + $0x38] sm:$0xff] }
 0x5f7   : > { %3453 = vmatmul.mubr.f32.vlgmr.msra.gmra.mrb[12].mxu0 %v5087_v46  ;;  %2267 = vmatmul.mubr.f32.vlgmr.msra.gmra.mrb[16].mxu1 %v5087_v46 }
 0x5f8   : > { %3766 = vmatpush1.bf16.msra.mxu1 %v3765_v47  ;;  %3797 = vmatpush3.bf16.msra.mxu0 %v3796_v49  ;;  %v3791_v47 = vpack.c.bf16 %v2409_v43, %v2406_v39  ;;  %v2407_v49 = vld [vmem:[#allocation7 + $0x160] sm:$0xff]  ;;  %v3877_v43 = vpack.c.bf16 %v2769_v37, %v2768_v36 }
 0x5f9   : > { %3768 = vmatprep.subr.bf16.mxu1 %v3767_v45  ;;  %3798 = vmatprep.subr.bf16.mxu0 %v4352_v30  ;;  %v2410_v45 = vld [vmem:[#allocation7 + $0x178] sm:$0xff]  ;;  %v2598_v39 = vld [vmem:[#allocation8 + $0x40] sm:$0xff] }
 0x5fa   : > { %2492 = vmatprep.mubr.f32.mxu1 %v4350_v0  ;;  %3487 = vmatprep.mubr.msk.f32.mxu0 %vm4351_vm0, %v4350_v0  ;;  %v3817_v53 = vpack.c.bf16 %v2410_v45, %v2407_v49  ;;  %v2600_v49 = vld [vmem:[#allocation8 + $0x50] sm:$0xff]  ;;  %v2601_v45 = vld [vmem:[#allocation8 + $0x58] sm:$0xff] }
 0x5fb   : > { %v3859_v54 = vpack.c.bf16 %v2601_v45, %v2600_v49 }
 0x5fc   : > { %3770 = vmatpush1.bf16.msra.mxu1 %v3769_v58  ;;  %3800 = vmatpush3.bf16.msra.mxu0 %v3799_v60  ;;  %v2608_v58 = vld [vmem:[#allocation10 + $0x10] sm:$0xff]  ;;  %v5105_v60 = vld [vmem:[%s4765_s15] sm:$0xff]  ;;  %s4234_s15 = scalar_lea.vmem %s4233_s17, 256 }
 0x5fd   : > { %3772 = vmatprep.subr.bf16.mxu1 %v3771_v61  ;;  %3801 = vmatprep.subr.bf16.mxu0 %v4352_v30  ;;  %v3823_v61 = vpack.c.bf16 %v2609_v59, %v2608_v58  ;;  %v2603_v58 = vld [vmem:[#allocation8 + $0x68] sm:$0xff]  ;;  %v2774_v59 = vld [vmem:[#allocation11 + $0x60] sm:$0xff]  ;;  %p4236_p6 = scmp.lt.s32.totalorder %s4234_s15, %s4228_s1 }
 0x5ff   : > { %p4237_p9 = por %p4236_p6, %p4235_p0 }
 0x600   : > { %3774 = vmatpush1.bf16.msra.mxu1 %v3773_v7  ;;  %3803 = vmatpush3.bf16.msra.mxu0 %v3802_v10  ;;  %v3829_v7 = vpack.c.bf16 %v2613_v4, %v2612_v3  ;;  %v2615_v10 = vld [vmem:[#allocation10 + $0x48] sm:$0xff]  ;;  %v2605_v3 = vld [vmem:[#allocation8 + $0x78] sm:$0xff]  ;;  %v2776_v4 = vld [vmem:[#allocation11 + $0x70] sm:$0xff] }
 0x601   : > { %3776 = vmatprep.subr.bf16.mxu1 %v3775_v12  ;;  %3804 = vmatprep.subr.bf16.mxu0 %v4352_v30  ;;  %v3832_v12 = vpack.c.bf16 %v2615_v10, %v2614_v9  ;;  %p4238_p10 = pnand %p4237_p9, %p4231_p5 }
 0x604   : > { %3778 = vmatpush1.bf16.msra.mxu1 %v3777_v23  ;;  %3806 = vmatpush3.bf16.msra.mxu0 %v3805_v16  ;;  %v3838_v23 = vpack.c.bf16 %v2619_v21, %v2618_v20  ;;  %v2621_v16 = vld [vmem:[#allocation10 + $0x78] sm:$0xff]  ;;  %v2411_v21 = vld [vmem:[%s5248_s11] sm:$0x7] }
 0x605   : > { %3780 = vmatprep.subr.bf16.mxu1 %v3779_v6  ;;  %3807 = vmatprep.subr.bf16.mxu0 %v4352_v30  ;;  %v3841_v6 = vpack.c.bf16 %v2621_v16, %v2620_v24 }
 0x608   : > { %3782 = vmatpush1.bf16.msra.mxu1 %v3781_v57  ;;  %3809 = vmatpush3.bf16.msra.mxu0 %v3808_v5  ;;  %v2592_v57 = vld [vmem:[#allocation8 + $0x10] sm:$0xff]  ;;  %v3868_v5 = vpack.c.bf16 %v2763_v32, %v2762_v52 }
 0x609   : > { %3784 = vmatprep.subr.bf16.mxu1 %v3783_v8  ;;  %3810 = vmatprep.subr.bf16.mxu0 %v4352_v30  ;;  %v2764_v8 = vld [vmem:[#allocation11 + $0x10] sm:$0xff]  ;;  %v3847_v28 = vpack.c.bf16 %v2593_v1, %v2592_v57 }
 0x60a   : > { %v3871_v26 = vpack.c.bf16 %v2765_v11, %v2764_v8 }
 0x60c   : > { %3786 = vmatpush1.bf16.msra.mxu1 %v3785_v35  ;;  %3812 = vmatpush3.bf16.msra.mxu0 %v3811_v38  ;;  %v2767_v35 = vld [vmem:[#allocation11 + $0x28] sm:$0xff]  ;;  %v2596_v38 = vld [vmem:[#allocation8 + $0x30] sm:$0xff] }
 0x60d   : > { %3788 = vmatprep.subr.bf16.mxu1 %v3787_v31  ;;  %3813 = vmatprep.subr.bf16.mxu0 %v4352_v30  ;;  %v3874_v29 = vpack.c.bf16 %v2767_v35, %v2766_v27  ;;  %v2597_v31 = vld [vmem:[#allocation8 + $0x38] sm:$0xff] }
 0x60e   : > { %v3853_v34 = vpack.c.bf16 %v2597_v31, %v2596_v38 }
 0x610   : > { %3790 = vmatpush1.bf16.msra.mxu1 %v3789_v41  ;;  %3815 = vmatpush3.bf16.msra.mxu0 %v3814_v44  ;;  %v2599_v41 = vld [vmem:[#allocation8 + $0x48] sm:$0xff] }
 0x611   : > { %3792 = vmatprep.subr.bf16.mxu1 %v3791_v47  ;;  %3816 = vmatprep.subr.bf16.mxu0 %v4352_v30  ;;  %v2771_v44 = vld [vmem:[#allocation11 + $0x48] sm:$0xff]  ;;  %v3856_v47 = vpack.c.bf16 %v2599_v41, %v2598_v39 }
 0x612   : > { %v3880_v48 = vpack.c.bf16 %v2771_v44, %v2770_v42 }
 0x614   : > { %3794 = vmatpush1.bf16.msra.mxu1 %v3793_v18  ;;  %3818 = vmatpush3.bf16.msra.mxu0 %v3817_v53  ;;  %v2772_v18 = vld [vmem:[#allocation11 + $0x50] sm:$0xff]  ;;  %v2773_v53 = vld [vmem:[#allocation11 + $0x58] sm:$0xff] }
 0x615   : > { %3819 = vmatprep.subr.bf16.mxu1 %v4352_v30  ;;  %3843 = vmatprep.subr.bf16.mxu0 %v4352_v30  ;;  %v3883_v55 = vpack.c.bf16 %v2773_v53, %v2772_v18 }
 0x617   : > { %2493 = vmatmul.mubr.f32.vlgmr.msra.gmra.mrb[16].mxu1 %v5105_v60  ;;  %3488 = vmatmul.mubr.f32.vlgmr.msra.gmra.mrb[14].mxu0 %v5105_v60 }
 0x618   : > { %3821 = vmatpush3.bf16.msra.mxu1 %v3820_v56  ;;  %3522 = vmatprep.mubr.msk.f32.mxu1 %vm4351_vm0, %v4350_v0  ;;  %v2602_v56 = vld [vmem:[#allocation8 + $0x60] sm:$0xff] }
 0x619   : > { %3822 = vmatprep.subr.bf16.mxu1 %v4352_v30  ;;  %3557 = vmatprep.mubr.msk.f32.mxu0 %vm4351_vm0, %v4350_v0  ;;  %v3862_v62 = vpack.c.bf16 %v2603_v58, %v2602_v56 }
 0x61a   : > { %3845 = vmatpush3.bf16.msra.mxu0 %v3844_v25 }
 0x61b   : > { %3846 = vmatprep.subr.bf16.mxu0 %v4352_v30 }
 0x61c   : > { %3824 = vmatpush3.bf16.msra.mxu1 %v3823_v61  ;;  %v2775_v61 = vld [vmem:[#allocation11 + $0x68] sm:$0xff] }
 0x61d   : > { %3825 = vmatprep.subr.bf16.mxu1 %v4352_v30  ;;  %v3886_v63 = vpack.c.bf16 %v2775_v61, %v2774_v59 }
 0x61e   : > { %3848 = vmatpush3.bf16.msra.mxu0 %v3847_v28 }
 0x61f   : > { %3849 = vmatprep.subr.bf16.mxu0 %v4352_v30 }
 0x620   : > { %3827 = vmatpush3.bf16.msra.mxu1 %v3826_v2  ;;  %v2604_v2 = vld [vmem:[#allocation8 + $0x70] sm:$0xff] }
 0x621   : > { %3828 = vmatprep.subr.bf16.mxu1 %v4352_v30  ;;  %v3865_v9 = vpack.c.bf16 %v2605_v3, %v2604_v2 }
 0x624   : > { %3830 = vmatpush3.bf16.msra.mxu1 %v3829_v7  ;;  %v2777_v7 = vld [vmem:[#allocation11 + $0x78] sm:$0xff] }
 0x625   : > { %3831 = vmatprep.subr.bf16.mxu1 %v4352_v30  ;;  %v3889_v10 = vpack.c.bf16 %v2777_v7, %v2776_v4 }
 0x628   : > { %3833 = vmatpush3.bf16.msra.mxu1 %v3832_v12 }
 0x629   : > { %3834 = vmatprep.subr.bf16.mxu1 %v4352_v30 }
 0x62c   : > { %3836 = vmatpush3.bf16.msra.mxu1 %v3835_v19 }
 0x62d   : > { %3837 = vmatprep.subr.bf16.mxu1 %v4352_v30 }
 0x630   : > { %3839 = vmatpush3.bf16.msra.mxu1 %v3838_v23  ;;  %v2343_v23 = vld [vmem:[%s5303_s25] sm:$0x7] }
 0x631   : > { %3840 = vmatprep.subr.bf16.mxu1 %v4352_v30  ;;  %v2348_v24 = vrot.slane %v2343_v23, %v4776_v14  ;;  %v2352_v16 = vrot.slane %v2343_v23, %v4813_v50 }
 0x634   : > { %3842 = vmatpush3.bf16.msra.mxu1 %v3841_v6 }
 0x635   : > { %3867 = vmatprep.subr.bf16.mxu1 %v4352_v30 }
 0x637   : > { %3523 = vmatmul.mubr.f32.vlgmr.msra.gmra.mrb[18].mxu1 %v4960_v40  ;;  %v2595_v40 = vld [vmem:[#allocation8 + $0x28] sm:$0xff] }
 0x638   : > { %3592 = vmatprep.mubr.msk.f32.mxu1 %vm4351_vm0, %v4350_v0  ;;  %3869 = vmatpush3.bf16.msra.mxu1 %v3868_v5  ;;  %v2594_v0 = vld [vmem:[#allocation8 + $0x20] sm:$0xff] }
 0x639   : > { %3870 = vmatprep.subr.bf16.mxu1 %v4352_v30  ;;  %v3850_v33 = vpack.c.bf16 %v2595_v40, %v2594_v0 }
 0x63b   : > { %3851 = vmatpush3.bf16.msra.mxu0 %v3850_v33 }
 0x63c   : > { %3872 = vmatpush3.bf16.msra.mxu1 %v3871_v26  ;;  %3852 = vmatprep.subr.bf16.mxu0 %v4352_v30 }
 0x63d   : > { %3873 = vmatprep.subr.bf16.mxu1 %v4352_v30 }
 0x63f   : > { %3854 = vmatpush3.bf16.msra.mxu0 %v3853_v34 }
 0x640   : > { %3875 = vmatpush3.bf16.msra.mxu1 %v3874_v29  ;;  %3855 = vmatprep.subr.bf16.mxu0 %v4352_v30 }
 0x641   : > { %3876 = vmatprep.subr.bf16.mxu1 %v4352_v30 }
 0x643   : > { %3857 = vmatpush3.bf16.msra.mxu0 %v3856_v47 }
 0x644   : > { %3878 = vmatpush3.bf16.msra.mxu1 %v3877_v43  ;;  %3858 = vmatprep.subr.bf16.mxu0 %v4352_v30 }
 0x645   : > { %3879 = vmatprep.subr.bf16.mxu1 %v4352_v30 }
 0x647   : > { %3860 = vmatpush3.bf16.msra.mxu0 %v3859_v54 }
 0x648   : > { %3881 = vmatpush3.bf16.msra.mxu1 %v3880_v48  ;;  %3861 = vmatprep.subr.bf16.mxu0 %v4352_v30 }
 0x649   : > { %3882 = vmatprep.subr.bf16.mxu1 %v4352_v30 }
 0x64b   : > { %3863 = vmatpush3.bf16.msra.mxu0 %v3862_v62 }
 0x64c   : > { %3884 = vmatpush3.bf16.msra.mxu1 %v3883_v55  ;;  %3864 = vmatprep.subr.bf16.mxu0 %v4352_v30 }
 0x64d   : > { %3885 = vmatprep.subr.bf16.mxu1 %v4352_v30 }
 0x64f   : > { %3866 = vmatpush3.bf16.msra.mxu0 %v3865_v9 }
 0x650   : > { %3887 = vmatpush3.bf16.msra.mxu1 %v3886_v63 }
 0x651   : > { %3888 = vmatprep.subr.bf16.mxu1 %v4352_v30  ;;  %v2416_v30 = vrot.slane %v2411_v21, %v4776_v14  ;;  %v2424_v14 = vrot.slane %v2411_v21, %v4816_v51 }
 0x653   : > { %v3891_v6 = vadd.f32 %v2416_v30, %v2348_v24 }
 0x654   : > { %3890 = vmatpush3.bf16.msra.mxu1 %v3889_v10 }
 0x657   : > { %3593 = vmatmul.mubr.f32.vlgmr.msra.gmra.mrb[20].mxu1 %v5087_v46  ;;  %v2420_v46 = vrot.slane %v2411_v21, %v4813_v50  ;;  %v2356_v50 = vrot.slane %v2343_v23, %v4816_v51 }
 0x659   : > { %v3893_v22 = vadd.f32 %v2420_v46, %v2352_v16 }
 0x6aa   : > { %v2198_v12 = vpop.f32.mrb[10].mxu0 }
 0x6ab   : > { %v3419_v13 = vpop.f32.mrb[11].mxu0 }
 0x6ca   : > { %v2339_v15 = vpop.f32.mrb[12].mxu0 }
 0x6cb   : > { %v2340_v19 = vadd.f32 %v2339_v15, %v2198_v12  ;;  %v3454_v20 = vpop.f32.mrb[13].mxu0 }
 0x6cd   : > { %v2362_v27 = vadd.f32 %v2356_v50, %v2340_v19 }
 0x6ea   : > { %v2494_v17 = vpop.f32.mrb[16].mxu1  ;;  %v2565_v52 = vpop.f32.mrb[14].mxu0 }
 0x6eb   : > { %v3892_v25 = vadd.f32 %v3891_v6, %v2494_v17  ;;  %v2496_v32 = vpop.f32.mrb[17].mxu1  ;;  %v3489_v57 = vpop.f32.mrb[15].mxu0  ;;  %v2566_v40 = vadd.f32 %v2565_v52, %v2424_v14 }
 0x6ec   : > { %v3894_v5 = vadd.f32 %v3893_v22, %v2496_v32 }
 0x6ed   : > { %v3098_v1 = vmul.f32 -1.442695, %v3892_v25 }
 0x6ee   : > { %v3099_v8 = vmul.f32 -1.442695, %v3894_v5 }
 0x6ef   : > { %4049 = vpow2.f32 %v3098_v1 }
 0x6f0   : > { %4051 = vpow2.f32 %v3099_v8 }
 0x6f9   : > { %v4050_v11 = vpop.eup %4049 }
 0x6fa   : > { %v2573_v28 = vadd.f32 1.0, %v4050_v11  ;;  %v4052_v26 = vpop.eup %4051 }
 0x6fb   : > { %v2580_v0 = vadd.f32 1.0, %v4052_v26 }
 0x6fc   : > { %4053 = vrcp.f32 %v2573_v28 }
 0x6fd   : > { %4055 = vrcp.f32 %v2580_v0 }
 0x706   : > { %v4054_v33 = vpop.eup %4053 }
 0x707   : > { %v2583_v35 = vmul.f32 %v4054_v33, %v2566_v40  ;;  %v4056_v34 = vpop.eup %4055 }
 0x708   : > { %v2586_v36 = vsub.f32 1.0, %v4056_v34  ;;  %v2588_v39 = vmul.f32 %v5105_v60, %v4056_v34 }
 0x709   : > { %v2584_v29 = vadd.f32 %v2583_v35, %v2362_v27 }
 0x70a   : > { %v2688_v38 = vpop.f32.mrb[18].mxu1 }
 0x70b   : > { %4057 = vtanh.f32 %v2584_v29  ;;  %v3524_v31 = vpop.f32.mrb[19].mxu1 }
 0x715   : > { %v4058_v51 = vpop.eup %4057 }
 0x716   : > { %v2587_v37 = vmul.f32 %v4058_v51, %v2586_v36 }
 0x718   : > { %v2589_v43 = vadd.f32 %v2588_v39, %v2587_v37 }
 0x71a   : > { %3558 = vmatmul.mubr.f32.vlgmr.msra.gmra.mrb[16].mxu0 %v2589_v43  ;;  %2858 = vst [vmem:[%s667_s9] sm:$0xff] %v2589_v43 }
 0x72a   : > { %v2844_v41 = vpop.f32.mrb[20].mxu1 }
 0x72b   : > { %v3594_v42 = vpop.f32.mrb[21].mxu1 }
 0x72c   : > { %4241 = shalt.err (!%p4238_p10)
}
 0x72d   : > { %s4242_s24 = scalar_lea.hbm %s5164_s21, 128  ;;  %s4246_s9 = scalar_lea.hbm %s5306_s16, 256 }
 0x72e   : > { %p4243_p13 = scmp.ne.s32.totalorder %s5164_s21, %s4242_s24  ;;  %p4247_p2 = scmp.lt.u32.totalorder %s5164_s21, %s5306_s16 }
 0x72f   : > { %p4248_p3 = scmp.lt.u32.totalorder %s4246_s9, %s4242_s24  ;;  %p4250_p7 = scmp.lt.u32.totalorder %s4242_s24, %s5164_s21 }
 0x730   : > { %p4244_p12 = pnand %p4243_p13, %p5307_p8 }
 0x731   : > { %p4249_p4 = por %p4248_p3, %p4247_p2 }
 0x732   : > { %p4245_p1 = pneg %p4244_p12 }
 0x733   : > { %p4251_p11 = por %p4250_p7, %p4249_p4 }
 0x735   : > { %p4252_p5 = pnand %p4251_p11, %p4245_p1 }
 0x737   : > { %4255 = shalt.err (!%p4252_p5)
}
 0x738   : > { %3924 = dma.vmem_to_hbm [thread:$0]  (%p5307_p8), %s2892_s22, 128, %s5164_s21, %s2865_s29  }
 0x739   : > { %s5308_s17 = sld [smem:[#allocation33_spill]]  ;;  %s660_s15 = scalar_lea.vmem [#allocation13], %s3082_s26 }
 0x73a   : > { %s2878_s24 = sshll.u32 %s660_s15, 4  ;;  %s5309_s9 = sld [smem:[#allocation34_spill]]  ;;  %s5196_s24 = int_to_ptr.vmem [resolvable:$true] %s2878_s24 }
 0x73b   : > { %s2860_s21 = scalar_lea.sflag [#allocation4], %s5152_s30  ;;  %s4256_s22 = scalar_lea.vmem %s5196_s24, 128 }
 0x73c   : > { %p4257_p0 = scmp.ne.s32.totalorder %s5196_s24, %s4256_s22  ;;  %s4356_s26 = smov [#allocation13]  }
 0x73d   : > { %s4260_s29 = sshll.u32 %s4356_s26, 4  ;;  %s4261_s29 = int_to_ptr.vmem [resolvable:$false] %s4260_s29 }
 0x73e   : > { %p4258_p6 = pnand %p4257_p0, %p5307_p8  ;;  %s4262_s28 = scalar_lea.vmem %s4261_s29, 256 }
 0x73f   : > { %v3100_v48 = vld [vmem:[%s5308_s17] ss:$0 sm:$0xff]  ;;  %p4263_p10 = scmp.lt.s32.totalorder %s5196_s24, %s4261_s29  ;;  %p4264_p13 = scmp.lt.s32.totalorder %s4262_s28, %s4256_s22 }
 0x740   : > { %s5194_s20 = scalar_lea.hbm %s5309_s9, %s3103_s18  ;;  %p4259_p9 = pneg %p4258_p6 }
 0x741   : > { %p4265_p12 = por %p4264_p13, %p4263_p10 }
 0x743   : > { %p4266_p1 = pnand %p4265_p12, %p4259_p9 }
 0x7ed   : > { %v2758_v60 = vpop.f32.mrb[16].mxu0 }
 0x7ee   : > { %v2759_v44 = vadd.f32 %v2758_v60, %v2688_v38  ;;  %v3559_v47 = vpop.f32.mrb[17].mxu0 }
 0x7f0   : > { %v2848_v49 = vadd.f32 %v2844_v41, %v2759_v44 }
 0x7f2   : > { %v2856_v45 = vadd.f32 %v3100_v48, %v2848_v49 }
 0x7f4   : > { %2857 = vst [vmem:[%s660_s15] sm:$0xff] %v2856_v45 }
 0x7f5   : > { %4269 = shalt.err (!%p4266_p1)
}
 0x7f6   : > { %s4270_s30 = scalar_lea.hbm %s5194_s20, 128  ;;  %s4274_s1 = scalar_lea.hbm %s5309_s9, 256 }
 0x7f7   : > { %p4271_p2 = scmp.ne.s32.totalorder %s5194_s20, %s4270_s30  ;;  %p4275_p7 = scmp.lt.u32.totalorder %s5194_s20, %s5309_s9 }
 0x7f8   : > { %p4276_p11 = scmp.lt.u32.totalorder %s4274_s1, %s4270_s30  ;;  %p4278_p0 = scmp.lt.u32.totalorder %s4270_s30, %s5194_s20 }
 0x7f9   : > { %p4272_p3 = pnand %p4271_p2, %p5307_p8 }
 0x7fa   : > { %p4277_p5 = por %p4276_p11, %p4275_p7 }
 0x7fb   : > { %p4273_p4 = pneg %p4272_p3 }
 0x7fc   : > { %p4279_p6 = por %p4278_p0, %p4277_p5 }
 0x7fe   : > { %p4280_p9 = pnand %p4279_p6, %p4273_p4 }
 0x800   : > { %4283 = shalt.err (!%p4280_p9)
}
 0x801   : > { %3923 = dma.vmem_to_hbm [thread:$0]  (%p5307_p8), %s5196_s24, 128, %s5194_s20, %s2860_s21  }
 0x802 PF: > { %s5310_s15 = sld [smem:[#allocation25_spill]]  ;;  %s5311_s25 = sld [smem:[#allocation22_spill]] }
 0x803   : > { %s5312_s27 = sld [smem:[#allocation29_spill]] }
 0x808   : > { %p3965_p10 = scmp.ge.s32.totalorder %s5310_s15, 2  ;;  %s2903_s22 = sand.u32 1, %s5311_s25  }
 0x809   : > { %p5313_p13 = scmp.ne.s32.totalorder %s5312_s27, 0  ;;  %s2904_s26 = scalar_lea.sflag [#allocation4], %s2903_s22 }
 0x80b   : > { %p3947_p12 = pnand %p3965_p10, %p5313_p13 }
 0x80d   : > { %4317 = dma.done.wait (!%p3947_p12), %s2904_s26, 128  }
 0x80e   : > { %4319 = vsyncadd (!%p3947_p12), %s2904_s26, 4294967168  ;;  %s2913_s29 = scalar_lea.sflag [#allocation15], %s2903_s22 }
 0x80f   : > { %4321 = dma.done.wait (!%p3947_p12), %s2913_s29, 128  }
 0x810   : > { %4323 = vsyncadd (!%p3947_p12), %s2913_s29, 4294967168  ;;  %s5314_s27 = sld [smem:[#allocation26_spill]]  ;;  %s5315_s24 = sld [smem:[#allocation23_spill]] }
 0x811   : > { %s5316_s25 = sld [smem:[#allocation24_spill]]  ;;  %s5317_s26 = sld [smem:[#allocation27_spill]] }
 0x816   : > { %p35_p8 = scmp.ge.s32.totalorder %s5314_s27, 4  }
 0x818   :  { %37 = sbr.rel (!%p35_p8) target bundleno = 16 (0x10), region = 167 }
 0x81f   :  { %2918 = vsyncpa [#allocation3], 1 }
 0x820   :  { %2920 = vsyncpa [#allocation3 + $0x1], 1 }
 0x821   :  { %2921 = vsyncpa [#allocation6], 1 }
 0x822   :  { %2922 = vsyncpa [#allocation9], 1 }
 0x823   :  { %2923 = vsyncpa [#allocation12], 1 }
 0x824   :  { %2924 = vsyncpa [#allocation4], 1 }
 0x825   :  { %2926 = vsyncpa [#allocation4 + $0x1], 1 }
 0x826   :  { %2927 = vsyncpa [#allocation15], 1 }
 0x827   :  { %2929 = vsyncpa [#allocation15 + $0x1], 1 }

</bundles_post_ra>
